<compile_context>
chip_gen: v7x
topology: tpu7x:2x2x1
jax: 0.10.0
libtpu: 0.0.40
codegen_flags: <defaults>
</compile_context>

<pallas_src>
import functools

import numpy as np
import jax
import jax.numpy as jnp
from jax import lax
from jax.experimental import pallas as pl
from jax.experimental.pallas import tpu as pltpu

SELU_ALPHA = 1.6732632423543772
SELU_SCALE = 1.0507009873554805
LANE = 128


def _selu(x):
    # exp(x)-1 (not expm1) to stay on the guaranteed Mosaic EUP path; the
    # negative branch only matters for x<=0 where the absolute error is tiny.
    return SELU_SCALE * jnp.where(x > 0.0, x, SELU_ALPHA * (jnp.exp(x) - 1.0))


def _round_up(x, m=LANE):
    return ((x + m - 1) // m) * m


# ---------------------------------------------------------------------------
# Static geometry
# ---------------------------------------------------------------------------
def _geometry(cfg):
    dsf = cfg["down_sample_factor"]
    nc, cm = cfg["num_channels"], cfg["channel_multiplication"]
    c = 1 + int(bool(cfg["flux"]))
    h = cfg["n_mels"]
    layers = []
    for i in range(cfg["num_feature_layers"]):
        oc = nc * cm ** i
        oh = (h + 2 - 3) // dsf + 1          # 3x3 conv, pad 1, stride (dsf, 1)
        layers.append(dict(c_in=c, h_in=h, oc=oc, oh=oh, sh=dsf))
        c, h = oc, oh
    widths = [_round_up(layers[0]["c_in"] * layers[0]["h_in"])]
    for g in layers:
        widths.append(_round_up(g["oc"] * g["oh"]))
    return layers, widths, c, h              # per-layer geom, slab lane widths


# ---------------------------------------------------------------------------
# Init-time weight folding (numpy, done once; nothing reshaped at forward)
# ---------------------------------------------------------------------------
def _fold_conv_weight(w, h_in, oh, stride_h, pad_h, k_pad, n_pad):
    """Fold a torch-layout conv weight (OC, C, KH, KW) into KW matrices of
    shape (k_pad, n_pad) mapping input lane (c*h_in + h) -> output lane
    (oc*oh + oh_i).  Mel padding is folded away: taps falling outside
    [0, h_in) are dropped (they would multiply the zero pad)."""
    w = np.asarray(w, np.float32)
    oc_, c_, kh_, kw_ = w.shape
    m = np.zeros((kw_, k_pad, n_pad), np.float32)
    for oh_i in range(oh):
        for ki in range(kh_):
            h = oh_i * stride_h + ki - pad_h
            if not (0 <= h < h_in):
                continue
            for c in range(c_):
                # all oc and all kj at once: (kw_, oc_)
                m[:, c * h_in + h, oh_i:oh_i + oc_ * oh:oh] += w[:, c, ki, :].T
    return m


def _fold_bias(b, oh, n_pad):
    b = np.asarray(b, np.float32)
    out = np.zeros((1, n_pad), np.float32)
    out[0, :b.shape[0] * oh] = np.repeat(b, oh)   # lane oc*oh+oh_i -> b[oc]
    return out


def init_params(key, cfg):
    layers, widths, c_fin, h_fin = _geometry(cfg)
    L, R = cfg["num_feature_layers"], cfg["num_residual_blocks"]
    D, ncls = cfg["classifier_dim"], cfg["n_classes"]
    dpad, ncpad, w_res = _round_up(D), _round_up(ncls), widths[L]

    k = key

    def nxt():
        nonlocal k
        k, sub = jax.random.split(k)
        return sub

    def nrm(shape, scale):
        return np.asarray(jax.random.normal(nxt(), shape, jnp.float32)) * scale

    params = {"conv_w": [], "conv_b": [], "res_w": [], "res_b": []}

    for i, g in enumerate(layers):
        w = nrm((g["oc"], g["c_in"], 3, 3), 0.1)
        b = nrm((g["oc"],), 0.01)
        params["conv_w"].append(jnp.asarray(
            _fold_conv_weight(w, g["h_in"], g["oh"], g["sh"], 1,
                              widths[i], widths[i + 1]), jnp.bfloat16))
        params["conv_b"].append(jnp.asarray(
            _fold_bias(b, g["oh"], widths[i + 1]), jnp.float32))

    for _ in range(R):
        w = nrm((c_fin, c_fin, 1, 3), 0.1)
        b = nrm((c_fin,), 0.01)
        params["res_w"].append(jnp.asarray(
            _fold_conv_weight(w, h_fin, h_fin, 1, 0, w_res, w_res),
            jnp.bfloat16))
        params["res_b"].append(jnp.asarray(
            _fold_bias(b, h_fin, w_res), jnp.float32))

    k_fc1 = c_fin * h_fin                                   # torch flatten c*h + h
    w1 = nrm((D, k_fc1), 0.1)
    b1 = nrm((D,), 0.01)
    fc1 = np.zeros((w_res, dpad), np.float32); fc1[:k_fc1, :D] = w1.T
    fc1b = np.zeros((1, dpad), np.float32);    fc1b[0, :D] = b1
    w2 = nrm((ncls, D), 0.1)
    b2 = nrm((ncls,), 0.01)
    fc2 = np.zeros((ncpad, dpad), np.float32); fc2[:ncls, :D] = w2
    fc2b = np.zeros((ncpad, 1), np.float32);   fc2b[:ncls, 0] = b2

    params["fc1_w"] = jnp.asarray(fc1, jnp.bfloat16)
    params["fc1_b"] = jnp.asarray(fc1b, jnp.float32)
    params["fc2_w"] = jnp.asarray(fc2, jnp.bfloat16)
    params["fc2_b"] = jnp.asarray(fc2b, jnp.float32)
    return params


# ---------------------------------------------------------------------------
# The single fused kernel (one batch tile per grid step)
# ---------------------------------------------------------------------------
def _make_kernel(cfg, T, B):
    L, R = cfg["num_feature_layers"], cfg["num_residual_blocks"]
    flux = bool(cfg["flux"])
    n_mels = cfg["n_mels"]
    ncls = cfg["n_classes"]
    band = T + 2                      # rows per sample: 1 pad + T data + 1 pad
    rm = B * band - 2                 # stacked M dim for every conv matmul
    f32, bf16 = jnp.float32, jnp.bfloat16

    def kernel(*args):
        x_ref = args[0]
        pos = 1
        conv_w = args[pos:pos + L]; pos += L
        conv_b = args[pos:pos + L]; pos += L
        res_w = args[pos:pos + R]; pos += R
        res_b = args[pos:pos + R]; pos += R
        fc1_w, fc1_b, fc2_w, fc2_b = args[pos:pos + 4]; pos += 4
        out_ref = args[pos]; pos += 1
        slabs = args[pos:]                           # L+1 VMEM activation slabs

        # -- 1. zero only the per-sample time-padding rows (cheap, per step) --
        for slab in slabs:
            zrow = jnp.zeros((1, slab.shape[1]), f32)
            for s in range(B):
                slab[pl.ds(s * band, 1), :] = zrow
                slab[pl.ds(s * band + T + 1, 1), :] = zrow

        # -- 2. input (+ flux) scatter: contiguous stores, no one-hot matmul --
        s0 = slabs[0]
        w0 = s0.shape[1]
        for s in range(B):
            x_s = x_ref[s]                                   # (T, n_mels) f32
            pieces = [x_s]
            if flux:
                if T > 1:
                    diff = jnp.maximum(x_s[1:, :] - x_s[:-1, :], 0.0)
                    flux_s = jnp.concatenate(
                        [jnp.zeros((1, n_mels), f32), diff], axis=0)
                else:
                    flux_s = jnp.zeros((T, n_mels), f32)
                pieces.append(flux_s)
            used = n_mels * len(pieces)
            if w0 > used:
                pieces.append(jnp.zeros((T, w0 - used), f32))
            s0[pl.ds(s * band + 1, T), :] = jnp.concatenate(pieces, axis=1)

        # -- 3. backbone: each layer = 3 time-shifted MXU matmuls + bias+SELU --
        cur = s0
        for i in range(L):
            wref = conv_w[i]
            acc = jnp.dot(cur[pl.ds(0, rm), :].astype(bf16), wref[0],
                          preferred_element_type=f32)
            acc = acc + jnp.dot(cur[pl.ds(1, rm), :].astype(bf16), wref[1],
                                preferred_element_type=f32)
            acc = acc + jnp.dot(cur[pl.ds(2, rm), :].astype(bf16), wref[2],
                                preferred_element_type=f32)
            y = _selu(acc + conv_b[i][...])
            nxt_s = slabs[i + 1]
            for s in range(B):                      # store only valid data rows
                nxt_s[pl.ds(s * band + 1, T), :] = y[s * band:s * band + T, :]
            cur = nxt_s

        # -- 4. residual blocks: (1,3) time conv + SELU + fused skip ----------
        for r in range(R):
            wref = res_w[r]
            acc = jnp.dot(cur[pl.ds(0, rm), :].astype(bf16), wref[0],
                          preferred_element_type=f32)
            acc = acc + jnp.dot(cur[pl.ds(1, rm), :].astype(bf16), wref[1],
                                preferred_element_type=f32)
            acc = acc + jnp.dot(cur[pl.ds(2, rm), :].astype(bf16), wref[2],
                                preferred_element_type=f32)
            y = _selu(acc + res_b[r][...])
            for s in range(B):
                rows = pl.ds(s * band + 1, T)
                cur[rows, :] = y[s * band:s * band + T, :] + cur[rows, :]

        # -- 5. classifier head: fc1 + SELU (+ dropout = identity) + fc2 ------
        if B == 1:
            feat = cur[pl.ds(1, T), :]
        else:
            feat = jnp.concatenate(
                [cur[pl.ds(s * band + 1, T), :] for s in range(B)], axis=0)
        h1 = _selu(jnp.dot(feat.astype(bf16), fc1_w[...],
                           preferred_element_type=f32) + fc1_b[...])
        # fc2 as an NT dot_general -> logits are (n_classes_pad, B*T); the
        # output block is (B, n_classes, T) so no wrapper-side transpose.
        logits = lax.dot_general(fc2_w[...], h1.astype(bf16),
                                 (((1,), (1,)), ((), ())),
                                 preferred_element_type=f32) + fc2_b[...]
        for s in range(B):
            out_ref[s] = logits[:ncls, s * T:(s + 1) * T].astype(out_ref.dtype)

    return kernel


# ---------------------------------------------------------------------------
# Forward wrapper: one pallas_call
# ---------------------------------------------------------------------------
def cnn_forward(params, x, cfg):
    """x: (bs, n_mels, T) -> (bs, n_classes, T)."""
    layers, widths, c_fin, h_fin = _geometry(cfg)
    L = cfg["num_feature_layers"]
    bs, n_mels, T = x.shape
    assert n_mels == cfg["n_mels"]

    # Batch tile: stack as many samples as reasonable per grid step so that
    # B_TILE*T becomes the M dim of every matmul (amortizes per-step overhead).
    b_tile = bs
    while b_tile > 1 and (bs % b_tile != 0 or b_tile * (T + 2) > 1024):
        b_tile -= 1

    # TODO(synk): review item 7 — fold this input transpose into the kernel for
    # realistic (memory-bound) sizes; kept wrapper-side here for robustness.
    x_t = jnp.transpose(x, (0, 2, 1)).astype(jnp.float32)   # (bs, T, n_mels)

    weights = (list(params["conv_w"]) + list(params["conv_b"])
               + list(params["res_w"]) + list(params["res_b"])
               + [params["fc1_w"], params["fc1_b"],
                  params["fc2_w"], params["fc2_b"]])

    def full_spec(a):
        nd = a.ndim
        return pl.BlockSpec(tuple(a.shape), lambda b, _nd=nd: (0,) * _nd)

    in_specs = ([pl.BlockSpec((b_tile, T, n_mels), lambda b: (b, 0, 0))]
                + [full_spec(w) for w in weights])

    band = T + 2
    scratch_shapes = [pltpu.VMEM((b_tile * band, widths[i]), jnp.float32)
                      for i in range(L + 1)]

    kernel = _make_kernel(cfg, T, b_tile)

    out = pl.pallas_call(
        kernel,
        out_shape=jax.ShapeDtypeStruct((bs, cfg["n_classes"], T), jnp.float32),
        grid=(bs // b_tile,),
        in_specs=in_specs,
        out_specs=pl.BlockSpec((b_tile, cfg["n_classes"], T),
                               lambda b: (b, 0, 0)),
        scratch_shapes=scratch_shapes,
        compiler_params=pltpu.CompilerParams(
            dimension_semantics=("parallel",)),
    )(x_t, *weights)
    return out


# ---------------------------------------------------------------------------
if __name__ == "__main__":
    cfg = dict(
        n_mels=16,
        n_classes=6,
        num_channels=4,
        num_feature_layers=2,
        channel_multiplication=2,
        num_residual_blocks=1,
        down_sample_factor=2,
        flux=True,
        classifier_dim=32,
        dropout=0.1,
        causal=False,
    )
    key = jax.random.PRNGKey(0)
    params = init_params(key, cfg)

    x = jax.random.normal(jax.random.fold_in(key, 123),
                          (2, cfg["n_mels"], 8), dtype=jnp.float32)

    fwd = jax.jit(functools.partial(cnn_forward, cfg=cfg))
    out = jax.block_until_ready(fwd(params, x))

    assert out.shape == (2, cfg["n_classes"], 8), out.shape
    assert out.dtype == jnp.float32
    assert bool(jnp.all(jnp.isfinite(out)))
    print("KERNEL_OK")
</pallas_src>

<mosaic_0001>
module attributes {stable_mosaic.version = 11 : i64} {
  func.func @kernel(%arg0: i32, %arg1: memref<2x8x16xf32, #tpu.memory_space<vmem>>, %arg2: memref<3x128x128xbf16, #tpu.memory_space<vmem>>, %arg3: memref<3x128x128xbf16, #tpu.memory_space<vmem>>, %arg4: memref<1x128xf32, #tpu.memory_space<vmem>>, %arg5: memref<1x128xf32, #tpu.memory_space<vmem>>, %arg6: memref<3x128x128xbf16, #tpu.memory_space<vmem>>, %arg7: memref<1x128xf32, #tpu.memory_space<vmem>>, %arg8: memref<128x128xbf16, #tpu.memory_space<vmem>>, %arg9: memref<1x128xf32, #tpu.memory_space<vmem>>, %arg10: memref<128x128xbf16, #tpu.memory_space<vmem>>, %arg11: memref<128x1xf32, #tpu.memory_space<vmem>>, %arg12: memref<2x6x8xf32, #tpu.memory_space<vmem>>, %arg13: memref<20x128xf32, #tpu.memory_space<vmem>>, %arg14: memref<20x128xf32, #tpu.memory_space<vmem>>, %arg15: memref<20x128xf32, #tpu.memory_space<vmem>>) attributes {dimension_semantics = [#tpu.dimension_semantics<parallel>], iteration_bounds = array<i64: 1>, scalar_prefetch = 0 : i64, scratch_operands = 3 : i64, tpu.core_type = #tpu.core_type<tc>, window_params = [{transform_indices = @transform_0, window_bounds = array<i64: 2, 8, 16>}, {pipeline_mode = #tpu.pipeline_mode<synchronous>, transform_indices = @transform_1, window_bounds = array<i64: 3, 128, 128>}, {pipeline_mode = #tpu.pipeline_mode<synchronous>, transform_indices = @transform_2, window_bounds = array<i64: 3, 128, 128>}, {pipeline_mode = #tpu.pipeline_mode<synchronous>, transform_indices = @transform_3, window_bounds = array<i64: 1, 128>}, {pipeline_mode = #tpu.pipeline_mode<synchronous>, transform_indices = @transform_4, window_bounds = array<i64: 1, 128>}, {pipeline_mode = #tpu.pipeline_mode<synchronous>, transform_indices = @transform_5, window_bounds = array<i64: 3, 128, 128>}, {pipeline_mode = #tpu.pipeline_mode<synchronous>, transform_indices = @transform_6, window_bounds = array<i64: 1, 128>}, {pipeline_mode = #tpu.pipeline_mode<synchronous>, transform_indices = @transform_7, window_bounds = array<i64: 128, 128>}, {pipeline_mode = #tpu.pipeline_mode<synchronous>, transform_indices = @transform_8, window_bounds = array<i64: 1, 128>}, {pipeline_mode = #tpu.pipeline_mode<synchronous>, transform_indices = @transform_9, window_bounds = array<i64: 128, 128>}, {pipeline_mode = #tpu.pipeline_mode<synchronous>, transform_indices = @transform_10, window_bounds = array<i64: 128, 1>}, {transform_indices = @transform_11, window_bounds = array<i64: 2, 6, 8>}]} {
    %cst = arith.constant 0.000000e+00 : f32
    %0 = vector.broadcast %cst : f32 to vector<1x128xf32>
    %c0 = arith.constant 0 : index
    %c0_0 = arith.constant 0 : index
    %1 = vector.load %arg13[%c0, %c0_0] : memref<20x128xf32, #tpu.memory_space<vmem>>, vector<1x128xf32>
    tpu.vector_store %arg13[%c0, %c0_0], %0 {strides = array<i32>} : memref<20x128xf32, #tpu.memory_space<vmem>>, vector<1x128xf32>,
    %c9 = arith.constant 9 : index
    %c0_1 = arith.constant 0 : index
    %2 = vector.load %arg13[%c9, %c0_1] : memref<20x128xf32, #tpu.memory_space<vmem>>, vector<1x128xf32>
    tpu.vector_store %arg13[%c9, %c0_1], %0 {strides = array<i32>} : memref<20x128xf32, #tpu.memory_space<vmem>>, vector<1x128xf32>,
    %c10 = arith.constant 10 : index
    %c0_2 = arith.constant 0 : index
    %3 = vector.load %arg13[%c10, %c0_2] : memref<20x128xf32, #tpu.memory_space<vmem>>, vector<1x128xf32>
    tpu.vector_store %arg13[%c10, %c0_2], %0 {strides = array<i32>} : memref<20x128xf32, #tpu.memory_space<vmem>>, vector<1x128xf32>,
    %c19 = arith.constant 19 : index
    %c0_3 = arith.constant 0 : index
    %4 = vector.load %arg13[%c19, %c0_3] : memref<20x128xf32, #tpu.memory_space<vmem>>, vector<1x128xf32>
    tpu.vector_store %arg13[%c19, %c0_3], %0 {strides = array<i32>} : memref<20x128xf32, #tpu.memory_space<vmem>>, vector<1x128xf32>,
    %cst_4 = arith.constant 0.000000e+00 : f32
    %5 = vector.broadcast %cst_4 : f32 to vector<1x128xf32>
    %c0_5 = arith.constant 0 : index
    %c0_6 = arith.constant 0 : index
    %6 = vector.load %arg14[%c0_5, %c0_6] : memref<20x128xf32, #tpu.memory_space<vmem>>, vector<1x128xf32>
    tpu.vector_store %arg14[%c0_5, %c0_6], %5 {strides = array<i32>} : memref<20x128xf32, #tpu.memory_space<vmem>>, vector<1x128xf32>,
    %c9_7 = arith.constant 9 : index
    %c0_8 = arith.constant 0 : index
    %7 = vector.load %arg14[%c9_7, %c0_8] : memref<20x128xf32, #tpu.memory_space<vmem>>, vector<1x128xf32>
    tpu.vector_store %arg14[%c9_7, %c0_8], %5 {strides = array<i32>} : memref<20x128xf32, #tpu.memory_space<vmem>>, vector<1x128xf32>,
    %c10_9 = arith.constant 10 : index
    %c0_10 = arith.constant 0 : index
    %8 = vector.load %arg14[%c10_9, %c0_10] : memref<20x128xf32, #tpu.memory_space<vmem>>, vector<1x128xf32>
    tpu.vector_store %arg14[%c10_9, %c0_10], %5 {strides = array<i32>} : memref<20x128xf32, #tpu.memory_space<vmem>>, vector<1x128xf32>,
    %c19_11 = arith.constant 19 : index
    %c0_12 = arith.constant 0 : index
    %9 = vector.load %arg14[%c19_11, %c0_12] : memref<20x128xf32, #tpu.memory_space<vmem>>, vector<1x128xf32>
    tpu.vector_store %arg14[%c19_11, %c0_12], %5 {strides = array<i32>} : memref<20x128xf32, #tpu.memory_space<vmem>>, vector<1x128xf32>,
    %cst_13 = arith.constant 0.000000e+00 : f32
    %10 = vector.broadcast %cst_13 : f32 to vector<1x128xf32>
    %c0_14 = arith.constant 0 : index
    %c0_15 = arith.constant 0 : index
    %11 = vector.load %arg15[%c0_14, %c0_15] : memref<20x128xf32, #tpu.memory_space<vmem>>, vector<1x128xf32>
    tpu.vector_store %arg15[%c0_14, %c0_15], %10 {strides = array<i32>} : memref<20x128xf32, #tpu.memory_space<vmem>>, vector<1x128xf32>,
    %c9_16 = arith.constant 9 : index
    %c0_17 = arith.constant 0 : index
    %12 = vector.load %arg15[%c9_16, %c0_17] : memref<20x128xf32, #tpu.memory_space<vmem>>, vector<1x128xf32>
    tpu.vector_store %arg15[%c9_16, %c0_17], %10 {strides = array<i32>} : memref<20x128xf32, #tpu.memory_space<vmem>>, vector<1x128xf32>,
    %c10_18 = arith.constant 10 : index
    %c0_19 = arith.constant 0 : index
    %13 = vector.load %arg15[%c10_18, %c0_19] : memref<20x128xf32, #tpu.memory_space<vmem>>, vector<1x128xf32>
    tpu.vector_store %arg15[%c10_18, %c0_19], %10 {strides = array<i32>} : memref<20x128xf32, #tpu.memory_space<vmem>>, vector<1x128xf32>,
    %c19_20 = arith.constant 19 : index
    %c0_21 = arith.constant 0 : index
    %14 = vector.load %arg15[%c19_20, %c0_21] : memref<20x128xf32, #tpu.memory_space<vmem>>, vector<1x128xf32>
    tpu.vector_store %arg15[%c19_20, %c0_21], %10 {strides = array<i32>} : memref<20x128xf32, #tpu.memory_space<vmem>>, vector<1x128xf32>,
    %c0_22 = arith.constant 0 : index
    %c0_23 = arith.constant 0 : index
    %c0_24 = arith.constant 0 : index
    %15 = vector.load %arg1[%c0_22, %c0_23, %c0_24] : memref<2x8x16xf32, #tpu.memory_space<vmem>>, vector<1x8x16xf32>
    %16 = vector.shape_cast %15 : vector<1x8x16xf32> to vector<8x16xf32>
    %17 = vector.extract_strided_slice %16 {offsets = [1, 0], sizes = [7, 16], strides = [1, 1]} : vector<8x16xf32> to vector<7x16xf32>
    %18 = vector.extract_strided_slice %16 {offsets = [0, 0], sizes = [7, 16], strides = [1, 1]} : vector<8x16xf32> to vector<7x16xf32>
    %19 = arith.subf %17, %18 : vector<7x16xf32>
    %cst_25 = arith.constant 0.000000e+00 : f32
    %20 = vector.broadcast %cst_25 : f32 to vector<7x16xf32>
    %21 = arith.maximumf %19, %20 : vector<7x16xf32>
    %cst_26 = arith.constant 0.000000e+00 : f32
    %22 = vector.broadcast %cst_26 : f32 to vector<1x16xf32>
    %23 = tpu.concatenate %22, %21 in 0 : vector<1x16xf32>, vector<7x16xf32> -> vector<8x16xf32>
    %cst_27 = arith.constant 0.000000e+00 : f32
    %24 = vector.broadcast %cst_27 : f32 to vector<8x96xf32>
    %25 = tpu.concatenate %16, %23, %24 in 1 : vector<8x16xf32>, vector<8x16xf32>, vector<8x96xf32> -> vector<8x128xf32>
    %c1 = arith.constant 1 : index
    %c0_28 = arith.constant 0 : index
    %26 = vector.load %arg13[%c1, %c0_28] : memref<20x128xf32, #tpu.memory_space<vmem>>, vector<8x128xf32>
    tpu.vector_store %arg13[%c1, %c0_28], %25 {strides = array<i32>} : memref<20x128xf32, #tpu.memory_space<vmem>>, vector<8x128xf32>,
    %c1_29 = arith.constant 1 : index
    %c0_30 = arith.constant 0 : index
    %c0_31 = arith.constant 0 : index
    %27 = vector.load %arg1[%c1_29, %c0_30, %c0_31] : memref<2x8x16xf32, #tpu.memory_space<vmem>>, vector<1x8x16xf32>
    %28 = vector.shape_cast %27 : vector<1x8x16xf32> to vector<8x16xf32>
    %29 = vector.extract_strided_slice %28 {offsets = [1, 0], sizes = [7, 16], strides = [1, 1]} : vector<8x16xf32> to vector<7x16xf32>
    %30 = vector.extract_strided_slice %28 {offsets = [0, 0], sizes = [7, 16], strides = [1, 1]} : vector<8x16xf32> to vector<7x16xf32>
    %31 = arith.subf %29, %30 : vector<7x16xf32>
    %cst_32 = arith.constant 0.000000e+00 : f32
    %32 = vector.broadcast %cst_32 : f32 to vector<7x16xf32>
    %33 = arith.maximumf %31, %32 : vector<7x16xf32>
    %cst_33 = arith.constant 0.000000e+00 : f32
    %34 = vector.broadcast %cst_33 : f32 to vector<1x16xf32>
    %35 = tpu.concatenate %34, %33 in 0 : vector<1x16xf32>, vector<7x16xf32> -> vector<8x16xf32>
    %cst_34 = arith.constant 0.000000e+00 : f32
    %36 = vector.broadcast %cst_34 : f32 to vector<8x96xf32>
    %37 = tpu.concatenate %28, %35, %36 in 1 : vector<8x16xf32>, vector<8x16xf32>, vector<8x96xf32> -> vector<8x128xf32>
    %c11 = arith.constant 11 : index
    %c0_35 = arith.constant 0 : index
    %38 = vector.load %arg13[%c11, %c0_35] : memref<20x128xf32, #tpu.memory_space<vmem>>, vector<8x128xf32>
    tpu.vector_store %arg13[%c11, %c0_35], %37 {strides = array<i32>} : memref<20x128xf32, #tpu.memory_space<vmem>>, vector<8x128xf32>,
    %c0_36 = arith.constant 0 : index
    %c0_37 = arith.constant 0 : index
    %39 = vector.load %arg13[%c0_36, %c0_37] : memref<20x128xf32, #tpu.memory_space<vmem>>, vector<18x128xf32>
    %40 = arith.truncf %39 : vector<18x128xf32> to vector<18x128xbf16>
    %c0_38 = arith.constant 0 : index
    %c0_39 = arith.constant 0 : index
    %c0_40 = arith.constant 0 : index
    %41 = vector.load %arg2[%c0_38, %c0_39, %c0_40] : memref<3x128x128xbf16, #tpu.memory_space<vmem>>, vector<1x128x128xbf16>
    %42 = vector.shape_cast %41 : vector<1x128x128xbf16> to vector<128x128xbf16>
    %cst_41 = arith.constant dense<0.000000e+00> : vector<18x128xf32>
    %43 = tpu.matmul %40, %42, %cst_41 {dimension_numbers = #tpu.dot_dimension_numbers<[1], [0], [0], [1], [0, 0, 1, 1], [], []>} : vector<18x128xbf16>, vector<128x128xbf16>, vector<18x128xf32> -> vector<18x128xf32>
    %c1_42 = arith.constant 1 : index
    %c0_43 = arith.constant 0 : index
    %44 = vector.load %arg13[%c1_42, %c0_43] : memref<20x128xf32, #tpu.memory_space<vmem>>, vector<18x128xf32>
    %45 = arith.truncf %44 : vector<18x128xf32> to vector<18x128xbf16>
    %c1_44 = arith.constant 1 : index
    %c0_45 = arith.constant 0 : index
    %c0_46 = arith.constant 0 : index
    %46 = vector.load %arg2[%c1_44, %c0_45, %c0_46] : memref<3x128x128xbf16, #tpu.memory_space<vmem>>, vector<1x128x128xbf16>
    %47 = vector.shape_cast %46 : vector<1x128x128xbf16> to vector<128x128xbf16>
    %cst_47 = arith.constant dense<0.000000e+00> : vector<18x128xf32>
    %48 = tpu.matmul %45, %47, %cst_47 {dimension_numbers = #tpu.dot_dimension_numbers<[1], [0], [0], [1], [0, 0, 1, 1], [], []>} : vector<18x128xbf16>, vector<128x128xbf16>, vector<18x128xf32> -> vector<18x128xf32>
    %49 = arith.addf %43, %48 : vector<18x128xf32>
    %c2 = arith.constant 2 : index
    %c0_48 = arith.constant 0 : index
    %50 = vector.load %arg13[%c2, %c0_48] : memref<20x128xf32, #tpu.memory_space<vmem>>, vector<18x128xf32>
    %51 = arith.truncf %50 : vector<18x128xf32> to vector<18x128xbf16>
    %c2_49 = arith.constant 2 : index
    %c0_50 = arith.constant 0 : index
    %c0_51 = arith.constant 0 : index
    %52 = vector.load %arg2[%c2_49, %c0_50, %c0_51] : memref<3x128x128xbf16, #tpu.memory_space<vmem>>, vector<1x128x128xbf16>
    %53 = vector.shape_cast %52 : vector<1x128x128xbf16> to vector<128x128xbf16>
    %cst_52 = arith.constant dense<0.000000e+00> : vector<18x128xf32>
    %54 = tpu.matmul %51, %53, %cst_52 {dimension_numbers = #tpu.dot_dimension_numbers<[1], [0], [0], [1], [0, 0, 1, 1], [], []>} : vector<18x128xbf16>, vector<128x128xbf16>, vector<18x128xf32> -> vector<18x128xf32>
    %55 = arith.addf %49, %54 : vector<18x128xf32>
    %c0_53 = arith.constant 0 : index
    %c0_54 = arith.constant 0 : index
    %56 = vector.load %arg4[%c0_53, %c0_54] : memref<1x128xf32, #tpu.memory_space<vmem>>, vector<1x128xf32>
    %57 = vector.broadcast %56 : vector<1x128xf32> to vector<18x128xf32>
    %58 = arith.addf %55, %57 : vector<18x128xf32>
    %cst_55 = arith.constant 0.000000e+00 : f32
    %59 = vector.broadcast %cst_55 : f32 to vector<18x128xf32>
    %60 = arith.cmpf ogt, %58, %59 : vector<18x128xf32>
    %61 = math.exp %58 : vector<18x128xf32>
    %cst_56 = arith.constant 1.000000e+00 : f32
    %62 = vector.broadcast %cst_56 : f32 to vector<18x128xf32>
    %63 = arith.subf %61, %62 : vector<18x128xf32>
    %cst_57 = arith.constant 1.67326319 : f32
    %64 = vector.broadcast %cst_57 : f32 to vector<18x128xf32>
    %65 = arith.mulf %64, %63 : vector<18x128xf32>
    %66 = arith.select %60, %58, %65 : vector<18x128xi1>, vector<18x128xf32>
    %cst_58 = arith.constant 1.05070102 : f32
    %67 = vector.broadcast %cst_58 : f32 to vector<18x128xf32>
    %68 = arith.mulf %67, %66 : vector<18x128xf32>
    %69 = vector.extract_strided_slice %68 {offsets = [0, 0], sizes = [8, 128], strides = [1, 1]} : vector<18x128xf32> to vector<8x128xf32>
    %c1_59 = arith.constant 1 : index
    %c0_60 = arith.constant 0 : index
    %70 = vector.load %arg14[%c1_59, %c0_60] : memref<20x128xf32, #tpu.memory_space<vmem>>, vector<8x128xf32>
    tpu.vector_store %arg14[%c1_59, %c0_60], %69 {strides = array<i32>} : memref<20x128xf32, #tpu.memory_space<vmem>>, vector<8x128xf32>,
    %71 = vector.extract_strided_slice %68 {offsets = [10, 0], sizes = [8, 128], strides = [1, 1]} : vector<18x128xf32> to vector<8x128xf32>
    %c11_61 = arith.constant 11 : index
    %c0_62 = arith.constant 0 : index
    %72 = vector.load %arg14[%c11_61, %c0_62] : memref<20x128xf32, #tpu.memory_space<vmem>>, vector<8x128xf32>
    tpu.vector_store %arg14[%c11_61, %c0_62], %71 {strides = array<i32>} : memref<20x128xf32, #tpu.memory_space<vmem>>, vector<8x128xf32>,
    %c0_63 = arith.constant 0 : index
    %c0_64 = arith.constant 0 : index
    %73 = vector.load %arg14[%c0_63, %c0_64] : memref<20x128xf32, #tpu.memory_space<vmem>>, vector<18x128xf32>
    %74 = arith.truncf %73 : vector<18x128xf32> to vector<18x128xbf16>
    %c0_65 = arith.constant 0 : index
    %c0_66 = arith.constant 0 : index
    %c0_67 = arith.constant 0 : index
    %75 = vector.load %arg3[%c0_65, %c0_66, %c0_67] : memref<3x128x128xbf16, #tpu.memory_space<vmem>>, vector<1x128x128xbf16>
    %76 = vector.shape_cast %75 : vector<1x128x128xbf16> to vector<128x128xbf16>
    %cst_68 = arith.constant dense<0.000000e+00> : vector<18x128xf32>
    %77 = tpu.matmul %74, %76, %cst_68 {dimension_numbers = #tpu.dot_dimension_numbers<[1], [0], [0], [1], [0, 0, 1, 1], [], []>} : vector<18x128xbf16>, vector<128x128xbf16>, vector<18x128xf32> -> vector<18x128xf32>
    %c1_69 = arith.constant 1 : index
    %c0_70 = arith.constant 0 : index
    %78 = vector.load %arg14[%c1_69, %c0_70] : memref<20x128xf32, #tpu.memory_space<vmem>>, vector<18x128xf32>
    %79 = arith.truncf %78 : vector<18x128xf32> to vector<18x128xbf16>
    %c1_71 = arith.constant 1 : index
    %c0_72 = arith.constant 0 : index
    %c0_73 = arith.constant 0 : index
    %80 = vector.load %arg3[%c1_71, %c0_72, %c0_73] : memref<3x128x128xbf16, #tpu.memory_space<vmem>>, vector<1x128x128xbf16>
    %81 = vector.shape_cast %80 : vector<1x128x128xbf16> to vector<128x128xbf16>
    %cst_74 = arith.constant dense<0.000000e+00> : vector<18x128xf32>
    %82 = tpu.matmul %79, %81, %cst_74 {dimension_numbers = #tpu.dot_dimension_numbers<[1], [0], [0], [1], [0, 0, 1, 1], [], []>} : vector<18x128xbf16>, vector<128x128xbf16>, vector<18x128xf32> -> vector<18x128xf32>
    %83 = arith.addf %77, %82 : vector<18x128xf32>
    %c2_75 = arith.constant 2 : index
    %c0_76 = arith.constant 0 : index
    %84 = vector.load %arg14[%c2_75, %c0_76] : memref<20x128xf32, #tpu.memory_space<vmem>>, vector<18x128xf32>
    %85 = arith.truncf %84 : vector<18x128xf32> to vector<18x128xbf16>
    %c2_77 = arith.constant 2 : index
    %c0_78 = arith.constant 0 : index
    %c0_79 = arith.constant 0 : index
    %86 = vector.load %arg3[%c2_77, %c0_78, %c0_79] : memref<3x128x128xbf16, #tpu.memory_space<vmem>>, vector<1x128x128xbf16>
    %87 = vector.shape_cast %86 : vector<1x128x128xbf16> to vector<128x128xbf16>
    %cst_80 = arith.constant dense<0.000000e+00> : vector<18x128xf32>
    %88 = tpu.matmul %85, %87, %cst_80 {dimension_numbers = #tpu.dot_dimension_numbers<[1], [0], [0], [1], [0, 0, 1, 1], [], []>} : vector<18x128xbf16>, vector<128x128xbf16>, vector<18x128xf32> -> vector<18x128xf32>
    %89 = arith.addf %83, %88 : vector<18x128xf32>
    %c0_81 = arith.constant 0 : index
    %c0_82 = arith.constant 0 : index
    %90 = vector.load %arg5[%c0_81, %c0_82] : memref<1x128xf32, #tpu.memory_space<vmem>>, vector<1x128xf32>
    %91 = vector.broadcast %90 : vector<1x128xf32> to vector<18x128xf32>
    %92 = arith.addf %89, %91 : vector<18x128xf32>
    %cst_83 = arith.constant 0.000000e+00 : f32
    %93 = vector.broadcast %cst_83 : f32 to vector<18x128xf32>
    %94 = arith.cmpf ogt, %92, %93 : vector<18x128xf32>
    %95 = math.exp %92 : vector<18x128xf32>
    %cst_84 = arith.constant 1.000000e+00 : f32
    %96 = vector.broadcast %cst_84 : f32 to vector<18x128xf32>
    %97 = arith.subf %95, %96 : vector<18x128xf32>
    %cst_85 = arith.constant 1.67326319 : f32
    %98 = vector.broadcast %cst_85 : f32 to vector<18x128xf32>
    %99 = arith.mulf %98, %97 : vector<18x128xf32>
    %100 = arith.select %94, %92, %99 : vector<18x128xi1>, vector<18x128xf32>
    %cst_86 = arith.constant 1.05070102 : f32
    %101 = vector.broadcast %cst_86 : f32 to vector<18x128xf32>
    %102 = arith.mulf %101, %100 : vector<18x128xf32>
    %103 = vector.extract_strided_slice %102 {offsets = [0, 0], sizes = [8, 128], strides = [1, 1]} : vector<18x128xf32> to vector<8x128xf32>
    %c1_87 = arith.constant 1 : index
    %c0_88 = arith.constant 0 : index
    %104 = vector.load %arg15[%c1_87, %c0_88] : memref<20x128xf32, #tpu.memory_space<vmem>>, vector<8x128xf32>
    tpu.vector_store %arg15[%c1_87, %c0_88], %103 {strides = array<i32>} : memref<20x128xf32, #tpu.memory_space<vmem>>, vector<8x128xf32>,
    %105 = vector.extract_strided_slice %102 {offsets = [10, 0], sizes = [8, 128], strides = [1, 1]} : vector<18x128xf32> to vector<8x128xf32>
    %c11_89 = arith.constant 11 : index
    %c0_90 = arith.constant 0 : index
    %106 = vector.load %arg15[%c11_89, %c0_90] : memref<20x128xf32, #tpu.memory_space<vmem>>, vector<8x128xf32>
    tpu.vector_store %arg15[%c11_89, %c0_90], %105 {strides = array<i32>} : memref<20x128xf32, #tpu.memory_space<vmem>>, vector<8x128xf32>,
    %c0_91 = arith.constant 0 : index
    %c0_92 = arith.constant 0 : index
    %107 = vector.load %arg15[%c0_91, %c0_92] : memref<20x128xf32, #tpu.memory_space<vmem>>, vector<18x128xf32>
    %108 = arith.truncf %107 : vector<18x128xf32> to vector<18x128xbf16>
    %c0_93 = arith.constant 0 : index
    %c0_94 = arith.constant 0 : index
    %c0_95 = arith.constant 0 : index
    %109 = vector.load %arg6[%c0_93, %c0_94, %c0_95] : memref<3x128x128xbf16, #tpu.memory_space<vmem>>, vector<1x128x128xbf16>
    %110 = vector.shape_cast %109 : vector<1x128x128xbf16> to vector<128x128xbf16>
    %cst_96 = arith.constant dense<0.000000e+00> : vector<18x128xf32>
    %111 = tpu.matmul %108, %110, %cst_96 {dimension_numbers = #tpu.dot_dimension_numbers<[1], [0], [0], [1], [0, 0, 1, 1], [], []>} : vector<18x128xbf16>, vector<128x128xbf16>, vector<18x128xf32> -> vector<18x128xf32>
    %c1_97 = arith.constant 1 : index
    %c0_98 = arith.constant 0 : index
    %112 = vector.load %arg15[%c1_97, %c0_98] : memref<20x128xf32, #tpu.memory_space<vmem>>, vector<18x128xf32>
    %113 = arith.truncf %112 : vector<18x128xf32> to vector<18x128xbf16>
    %c1_99 = arith.constant 1 : index
    %c0_100 = arith.constant 0 : index
    %c0_101 = arith.constant 0 : index
    %114 = vector.load %arg6[%c1_99, %c0_100, %c0_101] : memref<3x128x128xbf16, #tpu.memory_space<vmem>>, vector<1x128x128xbf16>
    %115 = vector.shape_cast %114 : vector<1x128x128xbf16> to vector<128x128xbf16>
    %cst_102 = arith.constant dense<0.000000e+00> : vector<18x128xf32>
    %116 = tpu.matmul %113, %115, %cst_102 {dimension_numbers = #tpu.dot_dimension_numbers<[1], [0], [0], [1], [0, 0, 1, 1], [], []>} : vector<18x128xbf16>, vector<128x128xbf16>, vector<18x128xf32> -> vector<18x128xf32>
    %117 = arith.addf %111, %116 : vector<18x128xf32>
    %c2_103 = arith.constant 2 : index
    %c0_104 = arith.constant 0 : index
    %118 = vector.load %arg15[%c2_103, %c0_104] : memref<20x128xf32, #tpu.memory_space<vmem>>, vector<18x128xf32>
    %119 = arith.truncf %118 : vector<18x128xf32> to vector<18x128xbf16>
    %c2_105 = arith.constant 2 : index
    %c0_106 = arith.constant 0 : index
    %c0_107 = arith.constant 0 : index
    %120 = vector.load %arg6[%c2_105, %c0_106, %c0_107] : memref<3x128x128xbf16, #tpu.memory_space<vmem>>, vector<1x128x128xbf16>
    %121 = vector.shape_cast %120 : vector<1x128x128xbf16> to vector<128x128xbf16>
    %cst_108 = arith.constant dense<0.000000e+00> : vector<18x128xf32>
    %122 = tpu.matmul %119, %121, %cst_108 {dimension_numbers = #tpu.dot_dimension_numbers<[1], [0], [0], [1], [0, 0, 1, 1], [], []>} : vector<18x128xbf16>, vector<128x128xbf16>, vector<18x128xf32> -> vector<18x128xf32>
    %123 = arith.addf %117, %122 : vector<18x128xf32>
    %c0_109 = arith.constant 0 : index
    %c0_110 = arith.constant 0 : index
    %124 = vector.load %arg7[%c0_109, %c0_110] : memref<1x128xf32, #tpu.memory_space<vmem>>, vector<1x128xf32>
    %125 = vector.broadcast %124 : vector<1x128xf32> to vector<18x128xf32>
    %126 = arith.addf %123, %125 : vector<18x128xf32>
    %cst_111 = arith.constant 0.000000e+00 : f32
    %127 = vector.broadcast %cst_111 : f32 to vector<18x128xf32>
    %128 = arith.cmpf ogt, %126, %127 : vector<18x128xf32>
    %129 = math.exp %126 : vector<18x128xf32>
    %cst_112 = arith.constant 1.000000e+00 : f32
    %130 = vector.broadcast %cst_112 : f32 to vector<18x128xf32>
    %131 = arith.subf %129, %130 : vector<18x128xf32>
    %cst_113 = arith.constant 1.67326319 : f32
    %132 = vector.broadcast %cst_113 : f32 to vector<18x128xf32>
    %133 = arith.mulf %132, %131 : vector<18x128xf32>
    %134 = arith.select %128, %126, %133 : vector<18x128xi1>, vector<18x128xf32>
    %cst_114 = arith.constant 1.05070102 : f32
    %135 = vector.broadcast %cst_114 : f32 to vector<18x128xf32>
    %136 = arith.mulf %135, %134 : vector<18x128xf32>
    %137 = vector.extract_strided_slice %136 {offsets = [0, 0], sizes = [8, 128], strides = [1, 1]} : vector<18x128xf32> to vector<8x128xf32>
    %c1_115 = arith.constant 1 : index
    %c0_116 = arith.constant 0 : index
    %138 = vector.load %arg15[%c1_115, %c0_116] : memref<20x128xf32, #tpu.memory_space<vmem>>, vector<8x128xf32>
    %139 = arith.addf %137, %138 : vector<8x128xf32>
    %c1_117 = arith.constant 1 : index
    %c0_118 = arith.constant 0 : index
    %140 = vector.load %arg15[%c1_117, %c0_118] : memref<20x128xf32, #tpu.memory_space<vmem>>, vector<8x128xf32>
    tpu.vector_store %arg15[%c1_117, %c0_118], %139 {strides = array<i32>} : memref<20x128xf32, #tpu.memory_space<vmem>>, vector<8x128xf32>,
    %141 = vector.extract_strided_slice %136 {offsets = [10, 0], sizes = [8, 128], strides = [1, 1]} : vector<18x128xf32> to vector<8x128xf32>
    %c11_119 = arith.constant 11 : index
    %c0_120 = arith.constant 0 : index
    %142 = vector.load %arg15[%c11_119, %c0_120] : memref<20x128xf32, #tpu.memory_space<vmem>>, vector<8x128xf32>
    %143 = arith.addf %141, %142 : vector<8x128xf32>
    %c11_121 = arith.constant 11 : index
    %c0_122 = arith.constant 0 : index
    %144 = vector.load %arg15[%c11_121, %c0_122] : memref<20x128xf32, #tpu.memory_space<vmem>>, vector<8x128xf32>
    tpu.vector_store %arg15[%c11_121, %c0_122], %143 {strides = array<i32>} : memref<20x128xf32, #tpu.memory_space<vmem>>, vector<8x128xf32>,
    %c1_123 = arith.constant 1 : index
    %c0_124 = arith.constant 0 : index
    %145 = vector.load %arg15[%c1_123, %c0_124] : memref<20x128xf32, #tpu.memory_space<vmem>>, vector<8x128xf32>
    %c11_125 = arith.constant 11 : index
    %c0_126 = arith.constant 0 : index
    %146 = vector.load %arg15[%c11_125, %c0_126] : memref<20x128xf32, #tpu.memory_space<vmem>>, vector<8x128xf32>
    %147 = tpu.concatenate %145, %146 in 0 : vector<8x128xf32>, vector<8x128xf32> -> vector<16x128xf32>
    %148 = arith.truncf %147 : vector<16x128xf32> to vector<16x128xbf16>
    %c0_127 = arith.constant 0 : index
    %c0_128 = arith.constant 0 : index
    %149 = vector.load %arg8[%c0_127, %c0_128] : memref<128x128xbf16, #tpu.memory_space<vmem>>, vector<128x128xbf16>
    %cst_129 = arith.constant dense<0.000000e+00> : vector<16x128xf32>
    %150 = tpu.matmul %148, %149, %cst_129 {dimension_numbers = #tpu.dot_dimension_numbers<[1], [0], [0], [1], [0, 0, 1, 1], [], []>} : vector<16x128xbf16>, vector<128x128xbf16>, vector<16x128xf32> -> vector<16x128xf32>
    %c0_130 = arith.constant 0 : index
    %c0_131 = arith.constant 0 : index
    %151 = vector.load %arg9[%c0_130, %c0_131] : memref<1x128xf32, #tpu.memory_space<vmem>>, vector<1x128xf32>
    %152 = vector.broadcast %151 : vector<1x128xf32> to vector<16x128xf32>
    %153 = arith.addf %150, %152 : vector<16x128xf32>
    %cst_132 = arith.constant 0.000000e+00 : f32
    %154 = vector.broadcast %cst_132 : f32 to vector<16x128xf32>
    %155 = arith.cmpf ogt, %153, %154 : vector<16x128xf32>
    %156 = math.exp %153 : vector<16x128xf32>
    %cst_133 = arith.constant 1.000000e+00 : f32
    %157 = vector.broadcast %cst_133 : f32 to vector<16x128xf32>
    %158 = arith.subf %156, %157 : vector<16x128xf32>
    %cst_134 = arith.constant 1.67326319 : f32
    %159 = vector.broadcast %cst_134 : f32 to vector<16x128xf32>
    %160 = arith.mulf %159, %158 : vector<16x128xf32>
    %161 = arith.select %155, %153, %160 : vector<16x128xi1>, vector<16x128xf32>
    %cst_135 = arith.constant 1.05070102 : f32
    %162 = vector.broadcast %cst_135 : f32 to vector<16x128xf32>
    %163 = arith.mulf %162, %161 : vector<16x128xf32>
    %c0_136 = arith.constant 0 : index
    %c0_137 = arith.constant 0 : index
    %164 = vector.load %arg10[%c0_136, %c0_137] : memref<128x128xbf16, #tpu.memory_space<vmem>>, vector<128x128xbf16>
    %165 = arith.truncf %163 : vector<16x128xf32> to vector<16x128xbf16>
    %cst_138 = arith.constant dense<0.000000e+00> : vector<128x16xf32>
    %166 = tpu.matmul %164, %165, %cst_138 {dimension_numbers = #tpu.dot_dimension_numbers<[1], [1], [0], [0], [0, 0, 1, 0], [], []>} : vector<128x128xbf16>, vector<16x128xbf16>, vector<128x16xf32> -> vector<128x16xf32>
    %c0_139 = arith.constant 0 : index
    %c0_140 = arith.constant 0 : index
    %167 = vector.load %arg11[%c0_139, %c0_140] : memref<128x1xf32, #tpu.memory_space<vmem>>, vector<128x1xf32>
    %168 = vector.broadcast %167 : vector<128x1xf32> to vector<128x16xf32>
    %169 = arith.addf %166, %168 : vector<128x16xf32>
    %170 = vector.extract_strided_slice %169 {offsets = [0, 0], sizes = [6, 8], strides = [1, 1]} : vector<128x16xf32> to vector<6x8xf32>
    %c0_141 = arith.constant 0 : index
    %c0_142 = arith.constant 0 : index
    %c0_143 = arith.constant 0 : index
    %171 = vector.load %arg12[%c0_141, %c0_142, %c0_143] : memref<2x6x8xf32, #tpu.memory_space<vmem>>, vector<1x6x8xf32>
    %172 = vector.shape_cast %171 : vector<1x6x8xf32> to vector<6x8xf32>
    %173 = vector.shape_cast %170 : vector<6x8xf32> to vector<1x6x8xf32>
    tpu.vector_store %arg12[%c0_141, %c0_142, %c0_143], %173 {strides = array<i32>} : memref<2x6x8xf32, #tpu.memory_space<vmem>>, vector<1x6x8xf32>,
    %174 = vector.extract_strided_slice %169 {offsets = [0, 8], sizes = [6, 8], strides = [1, 1]} : vector<128x16xf32> to vector<6x8xf32>
    %c1_144 = arith.constant 1 : index
    %c0_145 = arith.constant 0 : index
    %c0_146 = arith.constant 0 : index
    %175 = vector.load %arg12[%c1_144, %c0_145, %c0_146] : memref<2x6x8xf32, #tpu.memory_space<vmem>>, vector<1x6x8xf32>
    %176 = vector.shape_cast %175 : vector<1x6x8xf32> to vector<6x8xf32>
    %177 = vector.shape_cast %174 : vector<6x8xf32> to vector<1x6x8xf32>
    tpu.vector_store %arg12[%c1_144, %c0_145, %c0_146], %177 {strides = array<i32>} : memref<2x6x8xf32, #tpu.memory_space<vmem>>, vector<1x6x8xf32>,
    return
  }
  func.func @transform_0(%arg0: i32) -> (i32, i32, i32) {
    %c0_i32 = arith.constant 0 : i32
    %c0_i32_0 = arith.constant 0 : i32
    %c0_i32_1 = arith.constant 0 : i32
    return %arg0, %c0_i32, %c0_i32_0 : i32, i32, i32
  }
  func.func @transform_1(%arg0: i32) -> (i32, i32, i32) {
    %c0_i32 = arith.constant 0 : i32
    %c0_i32_0 = arith.constant 0 : i32
    %c0_i32_1 = arith.constant 0 : i32
    %c0_i32_2 = arith.constant 0 : i32
    return %c0_i32, %c0_i32_0, %c0_i32_1 : i32, i32, i32
  }
  func.func @transform_2(%arg0: i32) -> (i32, i32, i32) {
    %c0_i32 = arith.constant 0 : i32
    %c0_i32_0 = arith.constant 0 : i32
    %c0_i32_1 = arith.constant 0 : i32
    %c0_i32_2 = arith.constant 0 : i32
    return %c0_i32, %c0_i32_0, %c0_i32_1 : i32, i32, i32
  }
  func.func @transform_3(%arg0: i32) -> (i32, i32) {
    %c0_i32 = arith.constant 0 : i32
    %c0_i32_0 = arith.constant 0 : i32
    %c0_i32_1 = arith.constant 0 : i32
    return %c0_i32, %c0_i32_0 : i32, i32
  }
  func.func @transform_4(%arg0: i32) -> (i32, i32) {
    %c0_i32 = arith.constant 0 : i32
    %c0_i32_0 = arith.constant 0 : i32
    %c0_i32_1 = arith.constant 0 : i32
    return %c0_i32, %c0_i32_0 : i32, i32
  }
  func.func @transform_5(%arg0: i32) -> (i32, i32, i32) {
    %c0_i32 = arith.constant 0 : i32
    %c0_i32_0 = arith.constant 0 : i32
    %c0_i32_1 = arith.constant 0 : i32
    %c0_i32_2 = arith.constant 0 : i32
    return %c0_i32, %c0_i32_0, %c0_i32_1 : i32, i32, i32
  }
  func.func @transform_6(%arg0: i32) -> (i32, i32) {
    %c0_i32 = arith.constant 0 : i32
    %c0_i32_0 = arith.constant 0 : i32
    %c0_i32_1 = arith.constant 0 : i32
    return %c0_i32, %c0_i32_0 : i32, i32
  }
  func.func @transform_7(%arg0: i32) -> (i32, i32) {
    %c0_i32 = arith.constant 0 : i32
    %c0_i32_0 = arith.constant 0 : i32
    %c0_i32_1 = arith.constant 0 : i32
    return %c0_i32, %c0_i32_0 : i32, i32
  }
  func.func @transform_8(%arg0: i32) -> (i32, i32) {
    %c0_i32 = arith.constant 0 : i32
    %c0_i32_0 = arith.constant 0 : i32
    %c0_i32_1 = arith.constant 0 : i32
    return %c0_i32, %c0_i32_0 : i32, i32
  }
  func.func @transform_9(%arg0: i32) -> (i32, i32) {
    %c0_i32 = arith.constant 0 : i32
    %c0_i32_0 = arith.constant 0 : i32
    %c0_i32_1 = arith.constant 0 : i32
    return %c0_i32, %c0_i32_0 : i32, i32
  }
  func.func @transform_10(%arg0: i32) -> (i32, i32) {
    %c0_i32 = arith.constant 0 : i32
    %c0_i32_0 = arith.constant 0 : i32
    %c0_i32_1 = arith.constant 0 : i32
    return %c0_i32, %c0_i32_0 : i32, i32
  }
  func.func @transform_11(%arg0: i32) -> (i32, i32, i32) {
    %c0_i32 = arith.constant 0 : i32
    %c0_i32_0 = arith.constant 0 : i32
    %c0_i32_1 = arith.constant 0 : i32
    return %arg0, %c0_i32, %c0_i32_0 : i32, i32, i32
  }
}

</mosaic_0001>

<bundles_post_ra>
// kernel: cnn_forward.1
= control target key start
LH: loop header
LB: loop body
LE: loop exit
PB: predicated region body
PF: predicated region fallthrough
CT: control target
= control target key end

     0   :  { %16 = vsyncpa [#allocation6], 0  ;;  %s2643_s0 = inlined_call_operand.vmem [shape: f32[2,8,16], index: 0, kind: input, shape index: {}]   ;;  %s2644_s1 = inlined_call_operand.hbm [shape: bf16[3,128,128], index: 1, kind: input, shape index: {}]   ;;  %s2645_s2 = inlined_call_operand.hbm [shape: bf16[3,128,128], index: 2, kind: input, shape index: {}]   ;;  %s2646_s3 = inlined_call_operand.hbm [shape: f32[1,128], index: 3, kind: input, shape index: {}]   ;;  %s2647_s4 = inlined_call_operand.hbm [shape: f32[1,128], index: 4, kind: input, shape index: {}]   ;;  %s2648_s5 = inlined_call_operand.hbm [shape: bf16[3,128,128], index: 5, kind: input, shape index: {}]   ;;  %s2649_s6 = inlined_call_operand.vmem [shape: f32[1,128], index: 6, kind: input, shape index: {}]   ;;  %s2650_s7 = inlined_call_operand.vmem [shape: bf16[128,128], index: 7, kind: input, shape index: {}]   ;;  %s2651_s8 = inlined_call_operand.vmem [shape: f32[1,128], index: 8, kind: input, shape index: {}]   ;;  %s2652_s9 = inlined_call_operand.vmem [shape: bf16[128,128], index: 9, kind: input, shape index: {}]   ;;  %s2653_s10 = inlined_call_operand.vmem [shape: f32[128,1], index: 10, kind: input, shape index: {}]   ;;  %s2654_s11 = inlined_call_operand.vmem [shape: f32[2,6,8], index: 11, kind: output, shape index: {}]  }
   0x1   :  { %17 = vsyncpa [#allocation8], 0 }
   0x2   :  { %18 = vsyncpa [#allocation11], 0  ;;  %s2373_s17 = smov [#allocation7]   ;;  %s2374_s19 = smov [#allocation10]  }
   0x3   :  { %s38_s18 = sshll.u32 %s2373_s17, 4  ;;  %s61_s20 = sshll.u32 %s2374_s19, 4  ;;  %s39_s18 = int_to_ptr.vmem [resolvable:$true] %s38_s18  ;;  %s2446_s20 = int_to_ptr.vmem [resolvable:$true] %s61_s20 }
   0x4   :  { %s2257_s23 = scalar_lea.hbm %s2645_s2, 3072 }
   0x5   :  { %p2258_p0 = scmp.ne.s32.totalorder %s2645_s2, %s2257_s23  ;;  %p2261_p1 = scmp.lt.u32.totalorder %s2257_s23, %s2645_s2 }
   0x7   :  { %p2263_p2 = pnand %p2261_p1, %p2258_p0 }
   0x9   :  { %2266 = shalt.err (!%p2263_p2)
}
   0xa   :  { %s2267_s28 = scalar_lea.vmem %s39_s18, 3072  ;;  %p2272_p4 = scmp.lt.s32.totalorder %s39_s18, %s39_s18 }
   0xb   :  { %p2268_p3 = scmp.ne.s32.totalorder %s39_s18, %s2267_s28  ;;  %p2273_p5 = scmp.lt.s32.totalorder %s2267_s28, %s2267_s28 }
   0xd   :  { %p2274_p6 = por %p2273_p5, %p2272_p4 }
   0xf   :  { %p2275_p7 = pnand %p2274_p6, %p2268_p3 }
  0x11   :  { %2278 = shalt.err (!%p2275_p7)
}
  0x12   :  { %s2375_s29 = smov 64   ;;  %s2376_s30 = smov 4  }
  0x13   :  { %44 = dma.hbm_to_vmem [thread:$0]  %s2645_s2, 3072, %s39_s18, [#allocation8], %s2375_s29, %s2375_s29, %s2376_s30  }
  0x14   :  { %s2279_s16 = scalar_lea.hbm %s2647_s4, 16 }
  0x15   :  { %p2280_p8 = scmp.ne.s32.totalorder %s2647_s4, %s2279_s16  ;;  %p2283_p9 = scmp.lt.u32.totalorder %s2279_s16, %s2647_s4 }
  0x17   :  { %p2285_p10 = pnand %p2283_p9, %p2280_p8 }
  0x19   :  { %2288 = shalt.err (!%p2285_p10)
}
  0x1a   :  { %s2289_s23 = scalar_lea.vmem %s2446_s20, 16  ;;  %s2293_s2 = scalar_lea.vmem %s2446_s20, 32 }
  0x1b   :  { %p2290_p11 = scmp.ne.s32.totalorder %s2446_s20, %s2289_s23  ;;  %p2294_p12 = scmp.lt.s32.totalorder %s2446_s20, %s2446_s20 }
  0x1c   :  { %p2295_p13 = scmp.lt.s32.totalorder %s2293_s2, %s2289_s23 }
  0x1e   :  { %p2296_p0 = por %p2295_p13, %p2294_p12 }
  0x20   :  { %p2297_p1 = pnand %p2296_p0, %p2290_p11 }
  0x22   :  { %2300 = shalt.err (!%p2297_p1)
}
  0x23   :  { %64 = dma.hbm_to_vmem [thread:$0]  %s2647_s4, 16, %s2446_s20, [#allocation11]  }
  0x24   :  { %s2377_s25 = smov [#allocation5]   ;;  %s2378_s27 = smov [#allocation9]  }
  0x25   :  { %s26_s26 = sshll.u32 %s2377_s25, 4  ;;  %s51_s28 = sshll.u32 %s2378_s27, 4  ;;  %s27_s26 = int_to_ptr.vmem [resolvable:$true] %s26_s26  ;;  %s52_s28 = int_to_ptr.vmem [resolvable:$true] %s51_s28 }
  0x26   :  { %s2301_s14 = scalar_lea.hbm %s2644_s1, 3072 }
  0x27   :  { %p2302_p2 = scmp.ne.s32.totalorder %s2644_s1, %s2301_s14  ;;  %p2305_p3 = scmp.lt.u32.totalorder %s2301_s14, %s2644_s1 }
  0x29   :  { %p2307_p4 = pnand %p2305_p3, %p2302_p2 }
  0x2b   :  { %2310 = shalt.err (!%p2307_p4)
}
  0x2c   :  { %s2311_s4 = scalar_lea.vmem %s27_s26, 3072  ;;  %p2316_p6 = scmp.lt.s32.totalorder %s27_s26, %s27_s26 }
  0x2d   :  { %p2312_p5 = scmp.ne.s32.totalorder %s27_s26, %s2311_s4  ;;  %p2317_p7 = scmp.lt.s32.totalorder %s2311_s4, %s2311_s4 }
  0x2f   :  { %p2318_p8 = por %p2317_p7, %p2316_p6 }
  0x31   :  { %p2319_p9 = pnand %p2318_p8, %p2312_p5 }
  0x33   :  { %2322 = shalt.err (!%p2319_p9)
}
  0x34   :  { %32 = dma.hbm_to_vmem [thread:$0]  %s2644_s1, 3072, %s27_s26, [#allocation6], %s2375_s29, %s2375_s29, %s2376_s30  }
  0x35   :  { %s2323_s2 = scalar_lea.hbm %s2646_s3, 16 }
  0x36   :  { %p2324_p10 = scmp.ne.s32.totalorder %s2646_s3, %s2323_s2  ;;  %p2327_p11 = scmp.lt.u32.totalorder %s2323_s2, %s2646_s3 }
  0x38   :  { %p2329_p12 = pnand %p2327_p11, %p2324_p10 }
  0x3a   :  { %2332 = shalt.err (!%p2329_p12)
}
  0x3b   :  { %s2333_s12 = scalar_lea.vmem %s52_s28, 16  ;;  %s2337_s13 = scalar_lea.vmem %s52_s28, 32 }
  0x3c   :  { %p2334_p13 = scmp.ne.s32.totalorder %s52_s28, %s2333_s12  ;;  %p2338_p0 = scmp.lt.s32.totalorder %s52_s28, %s52_s28 }
  0x3d   :  { %p2339_p1 = scmp.lt.s32.totalorder %s2337_s13, %s2333_s12 }
  0x3f   :  { %p2340_p2 = por %p2339_p1, %p2338_p0 }
  0x41   :  { %p2341_p3 = pnand %p2340_p2, %p2334_p13 }
  0x43   :  { %2344 = shalt.err (!%p2341_p3)
}
  0x44   :  { %54 = dma.hbm_to_vmem [thread:$0]  %s2646_s3, 16, %s52_s28, [#allocation8]  }
  0x45   :  { %s2379_s14 = smov [#allocation12]   ;;  %s2345_s19 = scalar_lea.hbm %s2648_s5, 3072 }
  0x46   :  { %s70_s15 = sshll.u32 %s2379_s14, 4  ;;  %p2346_p4 = scmp.ne.s32.totalorder %s2648_s5, %s2345_s19  ;;  %s71_s15 = int_to_ptr.vmem [resolvable:$true] %s70_s15 }
  0x47   :  { %p2349_p5 = scmp.lt.u32.totalorder %s2345_s19, %s2648_s5 }
  0x49   :  { %p2351_p6 = pnand %p2349_p5, %p2346_p4 }
  0x4b   :  { %2354 = shalt.err (!%p2351_p6)
}
  0x4c   :  { %s2355_s23 = scalar_lea.vmem %s71_s15, 3072  ;;  %p2360_p8 = scmp.lt.s32.totalorder %s71_s15, %s71_s15 }
  0x4d   :  { %p2356_p7 = scmp.ne.s32.totalorder %s71_s15, %s2355_s23  ;;  %p2361_p9 = scmp.lt.s32.totalorder %s2355_s23, %s2355_s23 }
  0x4f   :  { %p2362_p10 = por %p2361_p9, %p2360_p8 }
  0x51   :  { %p2363_p11 = pnand %p2362_p10, %p2356_p7 }
  0x53   :  { %2366 = shalt.err (!%p2363_p11)
}
  0x54   :  { %76 = dma.hbm_to_vmem [thread:$0]  %s2648_s5, 3072, %s71_s15, [#allocation11], %s2375_s29, %s2375_s29, %s2376_s30  }
  0x55   :  { %2367 = dma.done.wait [#allocation6], 3072  }
  0x56   :  { %2368 = vsyncadd [#allocation6], 4294964224 }
  0x57   :  { %2369 = dma.done.wait [#allocation8], 3088  }
  0x58   :  { %2370 = vsyncadd [#allocation8], 4294964208 }
  0x59   :  { %2371 = dma.done.wait [#allocation11], 3088  }
  0x5a   :  { %2372 = vsyncadd [#allocation11], 4294964208  ;;  %v2380_v0 = vmov 0.0   ;;  %v2538_v1 = vld [vmem:[%s2643_s0] sm:$0xff]  ;;  %v2543_v2 = vld [vmem:[%s2643_s0 + $0x8] sm:$0xff]  ;;  %vm121_vm0 = vcmask 1040384  }
  0x5b   :  { %104 = vst [vmem:[#allocation2 + $0x9] sm:$0x1] %v2380_v0  ;;  %105 = vst [vmem:[#allocation2 + $0xa] sm:$0x1] %v2380_v0  ;;  %v117_v3 = vrot.slane %v2538_v1, 7  ;;  %v135_v4 = vrot.slane %v2543_v2, 7 }
  0x5c   :  { %103 = vst [vmem:[#allocation2] sm:$0x1] %v2380_v0  ;;  %106 = vst [vmem:[#allocation2 + $0x13] sm:$0x1] %v2380_v0  ;;  %v2144_v5 = vld [vmem:[#allocation5 + $0x40] sm:$0xff]   ;;  %v2146_v9 = vld [vmem:[#allocation5 + $0x48] sm:$0xff]  }
  0x5d   :  { %107 = vst [vmem:[#allocation3] sm:$0x1] %v2380_v0  ;;  %108 = vst [vmem:[#allocation3 + $0x9] sm:$0x1] %v2380_v0  ;;  %v2145_v6 = vld [vmem:[#allocation5] sm:$0xff]   ;;  %v119_v7 = vsub.f32 %v2538_v1, %v117_v3  ;;  %v137_v8 = vsub.f32 %v2543_v2, %v135_v4  ;;  %1910 = vmatprep.subr.bf16.mxu0 %v2144_v5  ;;  %v2147_v10 = vld [vmem:[#allocation5 + $0x8] sm:$0xff]  }
  0x5e   :  { %109 = vst [vmem:[#allocation3 + $0xa] sm:$0x1] %v2380_v0  ;;  %110 = vst [vmem:[#allocation3 + $0x13] sm:$0x1] %v2380_v0  ;;  %1930 = vmatprep.subr.bf16.mxu1 %v2145_v6  ;;  %1911 = vmatpush3.bf16.msra.mxu0 %v2144_v5  ;;  %v2148_v13 = vld [vmem:[#allocation5 + $0x50] sm:$0xff]   ;;  %s2381_s0 = smov 16  }
  0x5f   :  { %111 = vst [vmem:[#allocation4] sm:$0x1] %v2380_v0  ;;  %112 = vst [vmem:[#allocation4 + $0x9] sm:$0x1] %v2380_v0  ;;  %1931 = vmatpush3.bf16.msra.mxu1 %v2145_v6  ;;  %v120_v11 = vmax.f32 %v119_v7, 0.0  ;;  %v138_v12 = vmax.f32 %v137_v8, 0.0  ;;  %1912 = vmatprep.subr.bf16.mxu0 %v2146_v9 }
  0x60   :  { %113 = vst [vmem:[#allocation4 + $0xa] sm:$0x1] %v2380_v0  ;;  %114 = vst [vmem:[#allocation4 + $0x13] sm:$0x1] %v2380_v0  ;;  %v2149_v14 = vld [vmem:[#allocation5 + $0x10] sm:$0xff]   ;;  %1932 = vmatprep.subr.bf16.mxu1 %v2147_v10  ;;  %v2150_v17 = vld [vmem:[#allocation5 + $0x58] sm:$0xff]  }
  0x61   :  { %v122_v15 = vsel %vm121_vm0, 0.0, %v120_v11  ;;  %v139_v16 = vsel %vm121_vm0, 0.0, %v138_v12  ;;  %v2151_v18 = vld [vmem:[#allocation5 + $0x18] sm:$0xff]   ;;  %v2152_v19 = vld [vmem:[#allocation5 + $0x60] sm:$0xff]   ;;  %v2154_v21 = vld [vmem:[#allocation5 + $0x68] sm:$0xff]   ;;  %vm127_vm1 = vcmask 130048  }
  0x62   :  { %124 = vrot.lane.b32.xlu0 %v122_v15, %s2381_s0  ;;  %1913 = vmatpush3.bf16.msra.mxu0 %v2146_v9  ;;  %v2153_v20 = vld [vmem:[#allocation5 + $0x20] sm:$0xff]   ;;  %v2155_v22 = vld [vmem:[#allocation5 + $0x28] sm:$0xff]   ;;  %v2156_v23 = vld [vmem:[#allocation5 + $0x70] sm:$0xff]   ;;  %vm129_vm2 = vcmask 261120   ;;  %vm2382_vm3 = vmmov 1   ;;  %vm2383_vm11 = vmmov 0  }
  0x63   :  { %1933 = vmatpush3.bf16.msra.mxu1 %v2147_v10  ;;  %1914 = vmatprep.subr.bf16.mxu0 %v2148_v13  ;;  %v2157_v24 = vld [vmem:[#allocation5 + $0x30] sm:$0xff]   ;;  %v2158_v25 = vld [vmem:[#allocation5 + $0x78] sm:$0xff]   ;;  %v2160_v27 = vld [vmem:[#allocation5 + $0x80] sm:$0xff]   ;;  %s2385_s15 = smov 120  }
  0x64   :  { %1934 = vmatprep.subr.bf16.mxu1 %v2149_v14  ;;  %v2159_v26 = vld [vmem:[#allocation5 + $0x38] sm:$0xff]   ;;  %v2161_v44 = vld [vmem:[#allocation5 + $0x88] sm:$0xff]   ;;  %vm2254_vm4 = vmpackc.low %vm2382_vm3, %vm129_vm2 }
  0x65   :  { %v2162_v47 = vld [vmem:[#allocation5 + $0x90] sm:$0xff]   ;;  %v2163_v48 = vld [vmem:[#allocation5 + $0x98] sm:$0xff]   ;;  %v2164_v49 = vld [vmem:[#allocation5 + $0xa0] sm:$0xff]  }
  0x66   :  { %141 = vrot.lane.b32.xlu0 %v139_v16, %s2381_s0  ;;  %1915 = vmatpush3.bf16.msra.mxu0 %v2148_v13  ;;  %v2165_v50 = vld [vmem:[#allocation5 + $0xa8] sm:$0xff]   ;;  %v2166_v51 = vld [vmem:[#allocation5 + $0xb0] sm:$0xff]   ;;  %v2167_v52 = vld [vmem:[#allocation5 + $0xb8] sm:$0xff]  }
  0x67   :  { %1935 = vmatpush3.bf16.msra.mxu1 %v2149_v14  ;;  %1916 = vmatprep.subr.bf16.mxu0 %v2150_v17  ;;  %v2168_v55 = vld [vmem:[#allocation7 + $0x40] sm:$0xff]   ;;  %v2170_v57 = vld [vmem:[#allocation7 + $0x48] sm:$0xff]   ;;  %v2172_v59 = vld [vmem:[#allocation7 + $0x50] sm:$0xff]  }
  0x68   :  { %1936 = vmatprep.subr.bf16.mxu1 %v2151_v18  ;;  %v2169_v56 = vld [vmem:[#allocation7] sm:$0xff]   ;;  %v2171_v58 = vld [vmem:[#allocation7 + $0x8] sm:$0xff]   ;;  %v2173_v60 = vld [vmem:[#allocation7 + $0x10] sm:$0xff]  }
  0x69   :  { %v2174_v61 = vld [vmem:[#allocation7 + $0x58] sm:$0xff]   ;;  %v2176_v63 = vld [vmem:[#allocation7 + $0x60] sm:$0xff]   ;;  %v2179_v3 = vld [vmem:[#allocation7 + $0x28] sm:$0xff]  }
  0x6a   :  { %1917 = vmatpush3.bf16.msra.mxu0 %v2150_v17  ;;  %v2175_v62 = vld [vmem:[#allocation7 + $0x18] sm:$0xff]   ;;  %v2180_v4 = vld [vmem:[#allocation7 + $0x70] sm:$0xff]   ;;  %v2556_v8 = vld [vmem:[#allocation7 + $0x80] sm:$0xff]  }
  0x6b   :  { %1937 = vmatpush3.bf16.msra.mxu1 %v2151_v18  ;;  %1918 = vmatprep.subr.bf16.mxu0 %v2152_v19  ;;  %v2181_v5 = vld [vmem:[#allocation7 + $0x30] sm:$0xff]   ;;  %v2182_v6 = vld [vmem:[#allocation7 + $0x78] sm:$0xff]  }
  0x6c   :  { %1938 = vmatprep.subr.bf16.mxu1 %v2153_v20  ;;  %v2183_v7 = vld [vmem:[#allocation7 + $0x38] sm:$0xff]  }
  0x6e   :  { %1919 = vmatpush3.bf16.msra.mxu0 %v2152_v19 }
  0x6f   :  { %1939 = vmatpush3.bf16.msra.mxu1 %v2153_v20  ;;  %1920 = vmatprep.subr.bf16.mxu0 %v2154_v21 }
  0x70   :  { %1940 = vmatprep.subr.bf16.mxu1 %v2155_v22 }
  0x72   :  { %1921 = vmatpush3.bf16.msra.mxu0 %v2154_v21  ;;  %v1722_v21 = vld [vmem:[#allocation9] ss:$0 sm:$0xff] }
  0x73   :  { %1941 = vmatpush3.bf16.msra.mxu1 %v2155_v22  ;;  %1922 = vmatprep.subr.bf16.mxu0 %v2156_v23 }
  0x74   :  { %1942 = vmatprep.subr.bf16.mxu1 %v2157_v24 }
  0x76   :  { %1923 = vmatpush3.bf16.msra.mxu0 %v2156_v23 }
  0x77   :  { %1943 = vmatpush3.bf16.msra.mxu1 %v2157_v24  ;;  %1924 = vmatprep.subr.bf16.mxu0 %v2158_v25 }
  0x78   :  { %1944 = vmatprep.subr.bf16.mxu1 %v2159_v26 }
  0x7a   :  { %1925 = vmatpush3.bf16.msra.mxu0 %v2158_v25 }
  0x7b   :  { %1945 = vmatpush3.bf16.msra.mxu1 %v2159_v26  ;;  %1950 = vmatprep.subr.bf16.mxu0 %v2160_v27 }
  0x7c   :  { %1970 = vmatprep.subr.bf16.mxu1 %v2168_v55 }
  0xd4   :  { %v125_v28 = vpop.permute.xlu0 %124 }
  0xd5   :  { %v128_v29 = vsel %vm127_vm1, %v2538_v1, %v125_v28  ;;  %v2177_v1 = vld [vmem:[#allocation7 + $0x20] sm:$0xff]  }
  0xd6   :  { %v130_v30 = vsel %vm129_vm2, %v128_v29, 0.0 }
  0xd7   :  { %131 = vst [vmem:[#allocation2 + $0x1] sm:$0xff] %v130_v30 }
  0xd8   :  { %v142_v31 = vpop.permute.xlu0 %141 }
  0xd9   :  { %v144_v32 = vsel %vm127_vm1, %v2543_v2, %v142_v31  ;;  %v2178_v2 = vld [vmem:[#allocation7 + $0x68] sm:$0xff]   ;;  %vm1682_vm1 = vcmask 62464  }
  0xda   :  { %v145_v33 = vsel %vm129_vm2, %v144_v32, 0.0 }
  0xdb   :  { %146 = vst [vmem:[#allocation2 + $0xb] sm:$0xff] %v145_v33 }
  0xde   :  { %v147_v34 = vld [vmem:[#allocation2] sm:$0xff] }
  0xdf   :  { %v382_v43 = vld [vmem:[#allocation2 + $0x2] sm:$0xff] }
  0xe2   :  { %v169_v35 = vld [vmem:[#allocation2 + $0x9] sm:$0xff]  ;;  %v170_v37 = vld [vmem:[#allocation2 + $0x11] sm:$0x3] }
  0xe3   :  { %v148_v36 = vld [vmem:[#allocation2 + $0x8] sm:$0xff]  ;;  %v172_v39 = vpack.c.bf16 %v170_v37, %v170_v37  ;;  %v149_v40 = vld [vmem:[#allocation2 + $0x10] sm:$0x3]  ;;  %v2255_v45 = vpack.c.bf16 %v169_v35, %v128_v29  ;;  %v384_v53 = vld [vmem:[#allocation2 + $0x12] sm:$0x3] }
  0xe4   :  { %v150_v38 = vpack.c.bf16 %v148_v36, %v147_v34  ;;  %v383_v41 = vld [vmem:[#allocation2 + $0xa] sm:$0xff]  ;;  %v151_v42 = vpack.c.bf16 %v149_v40, %v149_v40  ;;  %v386_v54 = vpack.c.bf16 %v384_v53, %v384_v53 }
  0xe5   :  { %2256 = vmatprep.mubr.msk.bf16.mxu0 %vm2254_vm4, %v2255_v45  ;;  %v385_v46 = vpack.c.bf16 %v383_v41, %v382_v43 }
  0xe6   :  { %1946 = vmatprep.mubr.bf16.mxu1 %v150_v38  ;;  %1927 = vmatmul.mubr.bf16.vlgmr.msra.gmra.mrb[0].mxu0 %v172_v39 }
  0xe7   :  { %1947 = vmatmul.mubr.bf16.vlgmr.msra.gmra.mrb[0].mxu1 %v151_v42  ;;  %1951 = vmatpush3.bf16.msra.mxu0 %v2160_v27 }
  0xe8   :  { %1966 = vmatprep.mubr.bf16.mxu0 %v385_v46  ;;  %1952 = vmatprep.subr.bf16.mxu0 %v2161_v44 }
  0xe9   :  { %1971 = vmatpush3.bf16.msra.mxu1 %v2168_v55 }
  0xea   :  { %1972 = vmatprep.subr.bf16.mxu1 %v2170_v57 }
  0xeb   :  { %1953 = vmatpush3.bf16.msra.mxu0 %v2161_v44 }
  0xec   :  { %1954 = vmatprep.subr.bf16.mxu0 %v2162_v47 }
  0xed   :  { %1973 = vmatpush3.bf16.msra.mxu1 %v2170_v57 }
  0xee   :  { %1974 = vmatprep.subr.bf16.mxu1 %v2172_v59 }
  0xef   :  { %1955 = vmatpush3.bf16.msra.mxu0 %v2162_v47 }
  0xf0   :  { %1956 = vmatprep.subr.bf16.mxu0 %v2163_v48 }
  0xf1   :  { %1975 = vmatpush3.bf16.msra.mxu1 %v2172_v59 }
  0xf2   :  { %1976 = vmatprep.subr.bf16.mxu1 %v2174_v61 }
  0xf3   :  { %1957 = vmatpush3.bf16.msra.mxu0 %v2163_v48 }
  0xf4   :  { %1958 = vmatprep.subr.bf16.mxu0 %v2164_v49 }
  0xf5   :  { %1977 = vmatpush3.bf16.msra.mxu1 %v2174_v61 }
  0xf6   :  { %1978 = vmatprep.subr.bf16.mxu1 %v2176_v63 }
  0xf7   :  { %1959 = vmatpush3.bf16.msra.mxu0 %v2164_v49 }
  0xf8   :  { %1960 = vmatprep.subr.bf16.mxu0 %v2165_v50 }
  0xf9   :  { %1979 = vmatpush3.bf16.msra.mxu1 %v2176_v63  ;;  %v2187_v63 = vld [vmem:[#allocation7 + $0x98] sm:$0xff]  }
  0xfa   :  { %1980 = vmatprep.subr.bf16.mxu1 %v2178_v2 }
  0xfb   :  { %1961 = vmatpush3.bf16.msra.mxu0 %v2165_v50 }
  0xfc   :  { %1962 = vmatprep.subr.bf16.mxu0 %v2166_v51 }
  0xfd   :  { %1981 = vmatpush3.bf16.msra.mxu1 %v2178_v2  ;;  %v2189_v2 = vld [vmem:[#allocation7 + $0xa8] sm:$0xff]  }
  0xfe   :  { %1982 = vmatprep.subr.bf16.mxu1 %v2180_v4 }
  0xff   :  { %1963 = vmatpush3.bf16.msra.mxu0 %v2166_v51 }
 0x100   :  { %1964 = vmatprep.subr.bf16.mxu0 %v2167_v52 }
 0x101   :  { %1983 = vmatpush3.bf16.msra.mxu1 %v2180_v4  ;;  %v2191_v4 = vld [vmem:[#allocation7 + $0xb8] sm:$0xff]  }
 0x102   :  { %1984 = vmatprep.subr.bf16.mxu1 %v2182_v6 }
 0x103   :  { %1965 = vmatpush3.bf16.msra.mxu0 %v2167_v52 }
 0x104   :  { %1990 = vmatprep.subr.bf16.mxu0 %v2169_v56 }
 0x105   :  { %1985 = vmatpush3.bf16.msra.mxu1 %v2182_v6 }
 0x106   :  { %1967 = vmatmul.mubr.bf16.vlgmr.msra.gmra.mrb[4].mxu0 %v386_v54  ;;  %2010 = vmatprep.subr.bf16.mxu1 %v2556_v8 }
 0x107   :  { %1991 = vmatpush3.bf16.msra.mxu0 %v2169_v56 }
 0x108   :  { %1992 = vmatprep.subr.bf16.mxu0 %v2171_v58 }
 0x10b   :  { %1993 = vmatpush3.bf16.msra.mxu0 %v2171_v58 }
 0x10c   :  { %1994 = vmatprep.subr.bf16.mxu0 %v2173_v60 }
 0x10f   :  { %1995 = vmatpush3.bf16.msra.mxu0 %v2173_v60  ;;  %v2185_v60 = vld [vmem:[#allocation7 + $0x88] sm:$0xff]  }
 0x110   :  { %1996 = vmatprep.subr.bf16.mxu0 %v2175_v62 }
 0x113   :  { %1997 = vmatpush3.bf16.msra.mxu0 %v2175_v62  ;;  %v2186_v62 = vld [vmem:[#allocation7 + $0x90] sm:$0xff]  }
 0x114   :  { %1998 = vmatprep.subr.bf16.mxu0 %v2177_v1 }
 0x117   :  { %1999 = vmatpush3.bf16.msra.mxu0 %v2177_v1  ;;  %v2188_v1 = vld [vmem:[#allocation7 + $0xa0] sm:$0xff]  }
 0x118   :  { %2000 = vmatprep.subr.bf16.mxu0 %v2179_v3 }
 0x11b   :  { %2001 = vmatpush3.bf16.msra.mxu0 %v2179_v3  ;;  %v2190_v3 = vld [vmem:[#allocation7 + $0xb0] sm:$0xff]  }
 0x11c   :  { %2002 = vmatprep.subr.bf16.mxu0 %v2181_v5 }
 0x11f   :  { %2003 = vmatpush3.bf16.msra.mxu0 %v2181_v5 }
 0x120   :  { %2004 = vmatprep.subr.bf16.mxu0 %v2183_v7 }
 0x123   :  { %2005 = vmatpush3.bf16.msra.mxu0 %v2183_v7  ;;  %v2192_v7 = vld [vmem:[#allocation12 + $0x40] sm:$0xff]  }
 0x124   :  { %2030 = vmatprep.subr.bf16.mxu0 %v2192_v7 }
 0x1b9   :  { %v1928_v9 = vpop.f32.mrb[0].mxu0 }
 0x1ba   :  { %v1948_v10 = vpop.f32.mrb[0].mxu1  ;;  %v272_v12 = vpop.f32.mrb[1].mxu0 }
 0x1bb   :  { %v377_v11 = vadd.f32 %v1948_v10, %v1928_v9  ;;  %v368_v13 = vpop.f32.mrb[1].mxu1  ;;  %v1929_v15 = vpop.f32.mrb[2].mxu0  ;;  %v2194_v9 = vld [vmem:[#allocation12 + $0x48] sm:$0xff]  }
 0x1bc   :  { %v369_v14 = vadd.f32 %v368_v13, %v272_v12  ;;  %v1949_v16 = vpop.f32.mrb[2].mxu1  ;;  %v275_v17 = vpop.f32.mrb[3].mxu0  ;;  %v2195_v10 = vld [vmem:[#allocation12 + $0x8] sm:$0xff]   ;;  %v2197_v12 = vld [vmem:[#allocation12 + $0x10] sm:$0xff]   ;;  %v2198_v13 = vld [vmem:[#allocation12 + $0x58] sm:$0xff]  }
 0x1bd   :  { %v371_v18 = vpop.f32.mrb[3].mxu1  ;;  %v2200_v15 = vld [vmem:[#allocation12 + $0x60] sm:$0xff]  }
 0x1be   :  { %v372_v19 = vadd.f32 %v371_v18, %v275_v17  ;;  %v2201_v16 = vld [vmem:[#allocation12 + $0x20] sm:$0xff]   ;;  %v2202_v17 = vld [vmem:[#allocation12 + $0x68] sm:$0xff]  }
 0x1bf   :  { %v2203_v18 = vld [vmem:[#allocation12 + $0x28] sm:$0xff]  }
 0x1d9   :  { %v1968_v20 = vpop.f32.mrb[4].mxu0 }
 0x1da   :  { %v502_v22 = vadd.f32 %v1968_v20, %v377_v11  ;;  %v486_v23 = vpop.f32.mrb[5].mxu0  ;;  %v2196_v11 = vld [vmem:[#allocation12 + $0x50] sm:$0xff]  }
 0x1db   :  { %v500_v24 = vadd.f32 %v486_v23, %v369_v14  ;;  %v1969_v25 = vpop.f32.mrb[6].mxu0  ;;  %v2199_v14 = vld [vmem:[#allocation12 + $0x18] sm:$0xff]   ;;  %v2205_v20 = vld [vmem:[#allocation12 + $0x30] sm:$0xff]   ;;  %v2560_v23 = vld [vmem:[#allocation12 + $0x80] sm:$0xff]  }
 0x1dc   :  { %v512_v26 = vadd.f32 %v1722_v21, %v502_v22  ;;  %v489_v27 = vpop.f32.mrb[7].mxu0  ;;  %v2207_v22 = vld [vmem:[#allocation12 + $0x38] sm:$0xff]  }
 0x1dd   :  { %v510_v28 = vadd.f32 %v1722_v21, %v500_v24  ;;  %v501_v29 = vadd.f32 %v489_v27, %v372_v19  ;;  %v2204_v19 = vld [vmem:[#allocation12 + $0x70] sm:$0xff]  }
 0x1de   :  { %v520_v30 = vmul.f32 1.442695, %v512_v26  ;;  %vm515_vm5 = vcmp.gt.f32.partialorder %v512_v26, 0.0 }
 0x1df   :  { %v516_v31 = vmul.f32 1.442695, %v510_v28  ;;  %v511_v32 = vadd.f32 %v1722_v21, %v501_v29  ;;  %vm513_vm6 = vcmp.gt.f32.partialorder %v510_v28, 0.0  ;;  %v2206_v21 = vld [vmem:[#allocation12 + $0x78] sm:$0xff]  }
 0x1e0   :  { %2232 = vpow2.f32 %v520_v30 }
 0x1e1   :  { %2234 = vpow2.f32 %v516_v31  ;;  %v518_v33 = vmul.f32 1.442695, %v511_v32  ;;  %vm514_vm7 = vcmp.gt.f32.partialorder %v511_v32, 0.0 }
 0x1e3   :  { %2236 = vpow2.f32 %v518_v33 }
 0x1ea   :  { %v2233_v34 = vpop.eup %2232 }
 0x1eb   :  { %v2235_v35 = vpop.eup %2234  ;;  %v1725_v36 = vadd.f32 -1.0, %v2233_v34 }
 0x1ec   :  { %v1723_v37 = vadd.f32 -1.0, %v2235_v35 }
 0x1ed   :  { %v2237_v38 = vpop.eup %2236  ;;  %v527_v39 = vmul.f32 1.6732632, %v1725_v36  ;;  %v1750_v36 = vld [vmem:[#allocation10] ss:$0 sm:$0xff] }
 0x1ee   :  { %v525_v40 = vmul.f32 1.6732632, %v1723_v37  ;;  %v1724_v41 = vadd.f32 -1.0, %v2237_v38 }
 0x1ef   :  { %v530_v42 = vsel %vm515_vm5, %v512_v26, %v527_v39 }
 0x1f0   :  { %v533_v43 = vmul.f32 1.050701, %v530_v42  ;;  %v528_v44 = vsel %vm513_vm6, %v510_v28, %v525_v40  ;;  %v526_v45 = vmul.f32 1.6732632, %v1724_v41 }
 0x1f1   :  { %v531_v46 = vmul.f32 1.050701, %v528_v44 }
 0x1f2   :  { %536 = vst [vmem:[#allocation3 + $0x11] sm:$0x3] %v533_v43  ;;  %v529_v47 = vsel %vm514_vm7, %v511_v32, %v526_v45 }
 0x1f3   :  { %534 = vst [vmem:[#allocation3 + $0x1] sm:$0xff] %v531_v46  ;;  %v532_v48 = vmul.f32 1.050701, %v529_v47 }
 0x1f5   :  { %535 = vst [vmem:[#allocation3 + $0x9] sm:$0xfc] %v532_v48 }
 0x1f9   :  { %v560_v50 = vld [vmem:[#allocation3 + $0x11] sm:$0x3] }
 0x1fa   :  { %v537_v49 = vld [vmem:[#allocation3] sm:$0xff]  ;;  %v562_v58 = vpack.c.bf16 %v560_v50, %v560_v50  ;;  %v774_v5 = vld [vmem:[#allocation3 + $0x12] sm:$0x3] }
 0x1fb   :  { %v772_v59 = vld [vmem:[#allocation3 + $0x2] sm:$0xff]  ;;  %v776_v6 = vpack.c.bf16 %v774_v5, %v774_v5 }
 0x1fc   :  { %v559_v51 = vld [vmem:[#allocation3 + $0x9] sm:$0xff] }
 0x1fd   :  { %v538_v52 = vld [vmem:[#allocation3 + $0x8] sm:$0xff]  ;;  %v539_v53 = vld [vmem:[#allocation3 + $0x10] sm:$0x3]  ;;  %v561_v54 = vpack.c.bf16 %v559_v51, %v531_v46 }
 0x1fe   :  { %v540_v55 = vpack.c.bf16 %v538_v52, %v537_v49  ;;  %v541_v56 = vpack.c.bf16 %v539_v53, %v539_v53  ;;  %v773_v57 = vld [vmem:[#allocation3 + $0xa] sm:$0xff] }
 0x1ff   :  { %1986 = vmatprep.mubr.bf16.mxu1 %v561_v54  ;;  %v775_v61 = vpack.c.bf16 %v773_v57, %v772_v59 }
 0x200   :  { %2006 = vmatprep.mubr.bf16.mxu0 %v540_v55  ;;  %1987 = vmatmul.mubr.bf16.vlgmr.msra.gmra.mrb[4].mxu1 %v562_v58 }
 0x201   :  { %2007 = vmatmul.mubr.bf16.vlgmr.msra.gmra.mrb[8].mxu0 %v541_v56  ;;  %2011 = vmatpush3.bf16.msra.mxu1 %v2556_v8  ;;  %v2193_v8 = vld [vmem:[#allocation12] sm:$0xff]  }
 0x202   :  { %2026 = vmatprep.mubr.bf16.mxu1 %v775_v61  ;;  %2012 = vmatprep.subr.bf16.mxu1 %v2185_v60 }
 0x203   :  { %2031 = vmatpush3.bf16.msra.mxu0 %v2192_v7 }
 0x204   :  { %2032 = vmatprep.subr.bf16.mxu0 %v2194_v9 }
 0x205   :  { %2013 = vmatpush3.bf16.msra.mxu1 %v2185_v60 }
 0x206   :  { %2014 = vmatprep.subr.bf16.mxu1 %v2186_v62 }
 0x207   :  { %2033 = vmatpush3.bf16.msra.mxu0 %v2194_v9 }
 0x208   :  { %2034 = vmatprep.subr.bf16.mxu0 %v2196_v11 }
 0x209   :  { %2015 = vmatpush3.bf16.msra.mxu1 %v2186_v62 }
 0x20a   :  { %2016 = vmatprep.subr.bf16.mxu1 %v2187_v63 }
 0x20b   :  { %2035 = vmatpush3.bf16.msra.mxu0 %v2196_v11 }
 0x20c   :  { %2036 = vmatprep.subr.bf16.mxu0 %v2198_v13 }
 0x20d   :  { %2017 = vmatpush3.bf16.msra.mxu1 %v2187_v63 }
 0x20e   :  { %2018 = vmatprep.subr.bf16.mxu1 %v2188_v1 }
 0x20f   :  { %2037 = vmatpush3.bf16.msra.mxu0 %v2198_v13 }
 0x210   :  { %2038 = vmatprep.subr.bf16.mxu0 %v2200_v15 }
 0x211   :  { %2019 = vmatpush3.bf16.msra.mxu1 %v2188_v1 }
 0x212   :  { %2020 = vmatprep.subr.bf16.mxu1 %v2189_v2 }
 0x213   :  { %2039 = vmatpush3.bf16.msra.mxu0 %v2200_v15  ;;  %v2211_v15 = vld [vmem:[#allocation12 + $0x98] sm:$0xff]  }
 0x214   :  { %2040 = vmatprep.subr.bf16.mxu0 %v2202_v17 }
 0x215   :  { %2021 = vmatpush3.bf16.msra.mxu1 %v2189_v2 }
 0x216   :  { %2022 = vmatprep.subr.bf16.mxu1 %v2190_v3 }
 0x217   :  { %2041 = vmatpush3.bf16.msra.mxu0 %v2202_v17  ;;  %v2213_v17 = vld [vmem:[#allocation12 + $0xa8] sm:$0xff]  }
 0x218   :  { %2042 = vmatprep.subr.bf16.mxu0 %v2204_v19 }
 0x219   :  { %2023 = vmatpush3.bf16.msra.mxu1 %v2190_v3 }
 0x21a   :  { %2024 = vmatprep.subr.bf16.mxu1 %v2191_v4 }
 0x21b   :  { %2043 = vmatpush3.bf16.msra.mxu0 %v2204_v19  ;;  %v2215_v19 = vld [vmem:[#allocation12 + $0xb8] sm:$0xff]  }
 0x21c   :  { %2044 = vmatprep.subr.bf16.mxu0 %v2206_v21 }
 0x21d   :  { %2025 = vmatpush3.bf16.msra.mxu1 %v2191_v4 }
 0x21e   :  { %2050 = vmatprep.subr.bf16.mxu1 %v2193_v8 }
 0x21f   :  { %2045 = vmatpush3.bf16.msra.mxu0 %v2206_v21 }
 0x220   :  { %2027 = vmatmul.mubr.bf16.vlgmr.msra.gmra.mrb[8].mxu1 %v776_v6  ;;  %2070 = vmatprep.subr.bf16.mxu0 %v2560_v23 }
 0x221   :  { %2051 = vmatpush3.bf16.msra.mxu1 %v2193_v8 }
 0x222   :  { %2052 = vmatprep.subr.bf16.mxu1 %v2195_v10 }
 0x225   :  { %2053 = vmatpush3.bf16.msra.mxu1 %v2195_v10 }
 0x226   :  { %2054 = vmatprep.subr.bf16.mxu1 %v2197_v12 }
 0x229   :  { %2055 = vmatpush3.bf16.msra.mxu1 %v2197_v12  ;;  %v2209_v12 = vld [vmem:[#allocation12 + $0x88] sm:$0xff]  }
 0x22a   :  { %2056 = vmatprep.subr.bf16.mxu1 %v2199_v14 }
 0x22d   :  { %2057 = vmatpush3.bf16.msra.mxu1 %v2199_v14  ;;  %v2210_v14 = vld [vmem:[#allocation12 + $0x90] sm:$0xff]  }
 0x22e   :  { %2058 = vmatprep.subr.bf16.mxu1 %v2201_v16 }
 0x231   :  { %2059 = vmatpush3.bf16.msra.mxu1 %v2201_v16  ;;  %v2212_v16 = vld [vmem:[#allocation12 + $0xa0] sm:$0xff]  }
 0x232   :  { %2060 = vmatprep.subr.bf16.mxu1 %v2203_v18 }
 0x235   :  { %2061 = vmatpush3.bf16.msra.mxu1 %v2203_v18  ;;  %v2214_v18 = vld [vmem:[#allocation12 + $0xb0] sm:$0xff]  }
 0x236   :  { %2062 = vmatprep.subr.bf16.mxu1 %v2205_v20 }
 0x239   :  { %2063 = vmatpush3.bf16.msra.mxu1 %v2205_v20 }
 0x23a   :  { %2064 = vmatprep.subr.bf16.mxu1 %v2207_v22 }
 0x23d   :  { %2065 = vmatpush3.bf16.msra.mxu1 %v2207_v22  ;;  %v2216_v22 = vld [vmem:[%s2650_s7] sm:$0xff]  }
 0x23e   :  { %2090 = vmatprep.subr.bf16.mxu1 %v2380_v0 }
 0x2d3   :  { %v1988_v24 = vpop.f32.mrb[4].mxu1 }
 0x2d4   :  { %v2008_v25 = vpop.f32.mrb[8].mxu0  ;;  %v662_v27 = vpop.f32.mrb[5].mxu1 }
 0x2d5   :  { %v767_v26 = vadd.f32 %v2008_v25, %v1988_v24  ;;  %v758_v28 = vpop.f32.mrb[9].mxu0  ;;  %v1989_v30 = vpop.f32.mrb[6].mxu1  ;;  %v2218_v24 = vld [vmem:[%s2650_s7 + $0x10] sm:$0xff]   ;;  %v2219_v25 = vld [vmem:[%s2650_s7 + $0x18] sm:$0xff]  }
 0x2d6   :  { %v759_v29 = vadd.f32 %v758_v28, %v662_v27  ;;  %v2009_v31 = vpop.f32.mrb[10].mxu0  ;;  %v665_v32 = vpop.f32.mrb[7].mxu1  ;;  %v2221_v27 = vld [vmem:[%s2650_s7 + $0x28] sm:$0xff]   ;;  %v2222_v28 = vld [vmem:[%s2650_s7 + $0x30] sm:$0xff]  }
 0x2d7   :  { %v761_v33 = vpop.f32.mrb[11].mxu0 }
 0x2d8   :  { %v762_v34 = vadd.f32 %v761_v33, %v665_v32 }
 0x2f3   :  { %v2028_v35 = vpop.f32.mrb[8].mxu1 }
 0x2f4   :  { %v892_v37 = vadd.f32 %v2028_v35, %v767_v26  ;;  %v876_v38 = vpop.f32.mrb[9].mxu1  ;;  %v2220_v26 = vld [vmem:[%s2650_s7 + $0x20] sm:$0xff]  }
 0x2f5   :  { %v890_v39 = vadd.f32 %v876_v38, %v759_v29  ;;  %v2029_v40 = vpop.f32.mrb[10].mxu1  ;;  %v2223_v29 = vld [vmem:[%s2650_s7 + $0x38] sm:$0xff]  }
 0x2f6   :  { %v902_v41 = vadd.f32 %v1750_v36, %v892_v37  ;;  %v879_v42 = vpop.f32.mrb[11].mxu1 }
 0x2f7   :  { %v900_v43 = vadd.f32 %v1750_v36, %v890_v39  ;;  %v891_v44 = vadd.f32 %v879_v42, %v762_v34  ;;  %v1778_v42 = vld [vmem:[%s2649_s6] ss:$0 sm:$0xff] }
 0x2f8   :  { %v910_v45 = vmul.f32 1.442695, %v902_v41  ;;  %vm905_vm8 = vcmp.gt.f32.partialorder %v902_v41, 0.0 }
 0x2f9   :  { %v906_v46 = vmul.f32 1.442695, %v900_v43  ;;  %v901_v47 = vadd.f32 %v1750_v36, %v891_v44  ;;  %vm903_vm9 = vcmp.gt.f32.partialorder %v900_v43, 0.0 }
 0x2fa   :  { %2238 = vpow2.f32 %v910_v45 }
 0x2fb   :  { %2240 = vpow2.f32 %v906_v46  ;;  %v908_v48 = vmul.f32 1.442695, %v901_v47  ;;  %vm904_vm10 = vcmp.gt.f32.partialorder %v901_v47, 0.0 }
 0x2fd   :  { %2242 = vpow2.f32 %v908_v48 }
 0x304   :  { %v2239_v49 = vpop.eup %2238 }
 0x305   :  { %v2241_v50 = vpop.eup %2240  ;;  %v1753_v51 = vadd.f32 -1.0, %v2239_v49 }
 0x306   :  { %v1751_v52 = vadd.f32 -1.0, %v2241_v50 }
 0x307   :  { %v2243_v53 = vpop.eup %2242  ;;  %v917_v54 = vmul.f32 1.6732632, %v1753_v51 }
 0x308   :  { %v915_v55 = vmul.f32 1.6732632, %v1751_v52  ;;  %v1752_v56 = vadd.f32 -1.0, %v2243_v53 }
 0x309   :  { %v920_v57 = vsel %vm905_vm8, %v902_v41, %v917_v54 }
 0x30a   :  { %v923_v58 = vmul.f32 1.050701, %v920_v57  ;;  %v918_v59 = vsel %vm903_vm9, %v900_v43, %v915_v55  ;;  %v916_v60 = vmul.f32 1.6732632, %v1752_v56 }
 0x30b   :  { %v2564_v61 = vmul.f32 1.050701, %v918_v59 }
 0x30c   :  { %926 = vst [vmem:[#allocation4 + $0x11] sm:$0x3] %v923_v58  ;;  %v919_v62 = vsel %vm904_vm10, %v901_v47, %v916_v60 }
 0x30d   :  { %924 = vst [vmem:[#allocation4 + $0x1] sm:$0xff] %v2564_v61  ;;  %v922_v63 = vmul.f32 1.050701, %v919_v62 }
 0x30f   :  { %925 = vst [vmem:[#allocation4 + $0x9] sm:$0xfc] %v922_v63 }
 0x313   :  { %v950_v2 = vld [vmem:[#allocation4 + $0x11] sm:$0x3] }
 0x314   :  { %v927_v1 = vld [vmem:[#allocation4] sm:$0xff]  ;;  %v952_v10 = vpack.c.bf16 %v950_v2, %v950_v2  ;;  %v1164_v20 = vld [vmem:[#allocation4 + $0x12] sm:$0x3] }
 0x315   :  { %v1162_v11 = vld [vmem:[#allocation4 + $0x2] sm:$0xff]  ;;  %v1166_v21 = vpack.c.bf16 %v1164_v20, %v1164_v20 }
 0x316   :  { %v949_v3 = vld [vmem:[#allocation4 + $0x9] sm:$0xff] }
 0x317   :  { %v928_v4 = vld [vmem:[#allocation4 + $0x8] sm:$0xff]  ;;  %v929_v5 = vld [vmem:[#allocation4 + $0x10] sm:$0x3]  ;;  %v951_v6 = vpack.c.bf16 %v949_v3, %v2564_v61 }
 0x318   :  { %v930_v7 = vpack.c.bf16 %v928_v4, %v927_v1  ;;  %v931_v8 = vpack.c.bf16 %v929_v5, %v929_v5  ;;  %v1163_v9 = vld [vmem:[#allocation4 + $0xa] sm:$0xff] }
 0x319   :  { %2046 = vmatprep.mubr.bf16.mxu0 %v951_v6  ;;  %v1165_v13 = vpack.c.bf16 %v1163_v9, %v1162_v11  ;;  %v1317_v60 = vld [vmem:[#allocation4 + $0xb] sm:$0xff] }
 0x31a   :  { %2066 = vmatprep.mubr.bf16.mxu1 %v930_v7  ;;  %2047 = vmatmul.mubr.bf16.vlgmr.msra.gmra.mrb[12].mxu0 %v952_v10  ;;  %v1319_v3 = vrot.slane %v1317_v60, 6 }
 0x31b   :  { %2067 = vmatmul.mubr.bf16.vlgmr.msra.gmra.mrb[12].mxu1 %v931_v8  ;;  %2071 = vmatpush3.bf16.msra.mxu0 %v2560_v23  ;;  %v2217_v23 = vld [vmem:[%s2650_s7 + $0x8] sm:$0xff]  }
 0x31c   :  { %2086 = vmatprep.mubr.bf16.mxu0 %v1165_v13  ;;  %2072 = vmatprep.subr.bf16.mxu0 %v2209_v12 }
 0x31d   :  { %2091 = vmatpush3.bf16.msra.mxu1 %v2216_v22  ;;  %2106 = vmatprep.mubr.msk.bf16.mxu1 %vm2383_vm11, %v2380_v0 }
 0x31e   :  { %2092 = vmatprep.subr.bf16.mxu1 %v2380_v0 }
 0x31f   :  { %2073 = vmatpush3.bf16.msra.mxu0 %v2209_v12 }
 0x320   :  { %2074 = vmatprep.subr.bf16.mxu0 %v2210_v14 }
 0x321   :  { %2093 = vmatpush3.bf16.msra.mxu1 %v2217_v23 }
 0x322   :  { %2094 = vmatprep.subr.bf16.mxu1 %v2380_v0 }
 0x323   :  { %2075 = vmatpush3.bf16.msra.mxu0 %v2210_v14  ;;  %v2224_v14 = vld [vmem:[%s2652_s9] sm:$0xff]  }
 0x324   :  { %2076 = vmatprep.subr.bf16.mxu0 %v2211_v15 }
 0x325   :  { %2095 = vmatpush3.bf16.msra.mxu1 %v2218_v24 }
 0x326   :  { %2096 = vmatprep.subr.bf16.mxu1 %v2380_v0 }
 0x327   :  { %2077 = vmatpush3.bf16.msra.mxu0 %v2211_v15  ;;  %v1471_v15 = vld [vmem:[%s2653_s10] sm:$0xff] }
 0x328   :  { %2078 = vmatprep.subr.bf16.mxu0 %v2212_v16 }
 0x329   :  { %2097 = vmatpush3.bf16.msra.mxu1 %v2219_v25 }
 0x32a   :  { %2098 = vmatprep.subr.bf16.mxu1 %v2380_v0 }
 0x32b   :  { %2079 = vmatpush3.bf16.msra.mxu0 %v2212_v16  ;;  %v2384_v16 = vmov 0  }
 0x32c   :  { %2080 = vmatprep.subr.bf16.mxu0 %v2213_v17  ;;  %2142 = vset.pattern.permute.xlu1 %v2384_v16 }
 0x32d   :  { %2099 = vmatpush3.bf16.msra.mxu1 %v2220_v26  ;;  %2143 = vset.pattern.permute.xlu0 %v2384_v16 }
 0x32e   :  { %2100 = vmatprep.subr.bf16.mxu1 %v2380_v0  ;;  %1489 = vperm.xlu1 %2142, %v1471_v15  }
 0x32f   :  { %2081 = vmatpush3.bf16.msra.mxu0 %v2213_v17  ;;  %v1782_v17 = vld [vmem:[%s2651_s8] ss:$0 sm:$0xff] }
 0x330   :  { %2082 = vmatprep.subr.bf16.mxu0 %v2214_v18 }
 0x331   :  { %2101 = vmatpush3.bf16.msra.mxu1 %v2221_v27 }
 0x332   :  { %2102 = vmatprep.subr.bf16.mxu1 %v2380_v0 }
 0x333   :  { %2083 = vmatpush3.bf16.msra.mxu0 %v2214_v18 }
 0x334   :  { %2084 = vmatprep.subr.bf16.mxu0 %v2215_v19 }
 0x335   :  { %2103 = vmatpush3.bf16.msra.mxu1 %v2222_v28 }
 0x336   :  { %2104 = vmatprep.subr.bf16.mxu1 %v2380_v0 }
 0x337   :  { %2085 = vmatpush3.bf16.msra.mxu0 %v2215_v19 }
 0x339   :  { %2105 = vmatpush3.bf16.msra.mxu1 %v2223_v29 }
 0x33a   :  { %2087 = vmatmul.mubr.bf16.vlgmr.msra.gmra.mrb[16].mxu0 %v1166_v21 }
 0x33b   :  { %2112 = vmatprep.mubr.bf16.mxu0 %v2224_v14 }
 0x3ed   :  { %v2048_v30 = vpop.f32.mrb[12].mxu0 }
 0x3ee   :  { %v2068_v31 = vpop.f32.mrb[12].mxu1  ;;  %v1052_v33 = vpop.f32.mrb[13].mxu0 }
 0x3ef   :  { %v1157_v32 = vadd.f32 %v2068_v31, %v2048_v30  ;;  %v1148_v34 = vpop.f32.mrb[13].mxu1  ;;  %v2049_v36 = vpop.f32.mrb[14].mxu0 }
 0x3f0   :  { %v1149_v35 = vadd.f32 %v1148_v34, %v1052_v33  ;;  %v2069_v37 = vpop.f32.mrb[14].mxu1  ;;  %v1055_v38 = vpop.f32.mrb[15].mxu0 }
 0x3f1   :  { %v1151_v39 = vpop.f32.mrb[15].mxu1  ;;  %v2225_v37 = vld [vmem:[%s2652_s9 + $0x8] sm:$0xff]  }
 0x3f2   :  { %v1152_v40 = vadd.f32 %v1151_v39, %v1055_v38  ;;  %v2227_v38 = vld [vmem:[%s2652_s9 + $0x28] sm:$0xff]   ;;  %v2228_v39 = vld [vmem:[%s2652_s9 + $0x10] sm:$0xff]  }
 0x40d   :  { %v2088_v41 = vpop.f32.mrb[16].mxu0 }
 0x40e   :  { %v1282_v43 = vadd.f32 %v2088_v41, %v1157_v32  ;;  %v1266_v44 = vpop.f32.mrb[17].mxu0  ;;  %v2230_v41 = vld [vmem:[%s2652_s9 + $0x18] sm:$0xff]  }
 0x40f   :  { %v1280_v0 = vadd.f32 %v1266_v44, %v1149_v35  ;;  %v2089_v45 = vpop.f32.mrb[18].mxu0 }
 0x410   :  { %v1292_v46 = vadd.f32 %v1778_v42, %v1282_v43  ;;  %v1269_v47 = vpop.f32.mrb[19].mxu0  ;;  %v1490_v43 = vpop.permute.xlu1 %1489 }
 0x411   :  { %v1290_v48 = vadd.f32 %v1778_v42, %v1280_v0  ;;  %v1281_v49 = vadd.f32 %v1269_v47, %v1152_v40  ;;  %v2229_v40 = vld [vmem:[%s2652_s9 + $0x30] sm:$0xff]  }
 0x412   :  { %v1300_v50 = vmul.f32 1.442695, %v1292_v46  ;;  %vm1295_vm12 = vcmp.gt.f32.partialorder %v1292_v46, 0.0 }
 0x413   :  { %v1296_v51 = vmul.f32 1.442695, %v1290_v48  ;;  %v1291_v52 = vadd.f32 %v1778_v42, %v1281_v49  ;;  %vm1293_vm13 = vcmp.gt.f32.partialorder %v1290_v48, 0.0  ;;  %v2231_v42 = vld [vmem:[%s2652_s9 + $0x38] sm:$0xff]  }
 0x414   :  { %2244 = vpow2.f32 %v1300_v50 }
 0x415   :  { %2246 = vpow2.f32 %v1296_v51  ;;  %v1298_v53 = vmul.f32 1.442695, %v1291_v52  ;;  %vm1294_vm14 = vcmp.gt.f32.partialorder %v1291_v52, 0.0 }
 0x417   :  { %2248 = vpow2.f32 %v1298_v53 }
 0x41e   :  { %v2245_v54 = vpop.eup %2244 }
 0x41f   :  { %v2247_v55 = vpop.eup %2246  ;;  %v1781_v56 = vadd.f32 -1.0, %v2245_v54 }
 0x420   :  { %v1779_v57 = vadd.f32 -1.0, %v2247_v55 }
 0x421   :  { %v2249_v58 = vpop.eup %2248  ;;  %v1307_v59 = vmul.f32 1.6732632, %v1781_v56 }
 0x422   :  { %v1305_v62 = vmul.f32 1.6732632, %v1779_v57  ;;  %v1780_v63 = vadd.f32 -1.0, %v2249_v58 }
 0x423   :  { %v1310_v1 = vsel %vm1295_vm12, %v1292_v46, %v1307_v59 }
 0x424   :  { %v1313_v2 = vmul.f32 1.050701, %v1310_v1  ;;  %v1308_v4 = vsel %vm1293_vm13, %v1290_v48, %v1305_v62  ;;  %v1306_v5 = vmul.f32 1.6732632, %v1780_v63 }
 0x425   :  { %v1311_v6 = vmul.f32 1.050701, %v1308_v4 }
 0x426   :  { %v1322_v7 = vadd.f32 %v1319_v3, %v1313_v2  ;;  %v1309_v8 = vsel %vm1294_vm14, %v1291_v52, %v1306_v5 }
 0x427   :  { %v1315_v9 = vadd.f32 %v1311_v6, %v2564_v61  ;;  %v1312_v10 = vmul.f32 1.050701, %v1309_v8  ;;  %v2226_v61 = vld [vmem:[%s2652_s9 + $0x20] sm:$0xff]  }
 0x428   :  { %1324 = vst [vmem:[#allocation4 + $0x11] sm:$0x3] %v1322_v7 }
 0x429   :  { %1316 = vst [vmem:[#allocation4 + $0x1] sm:$0xff] %v1315_v9  ;;  %v1321_v11 = vadd.f32 %v1319_v3, %v1312_v10 }
 0x42b   :  { %1323 = vst [vmem:[#allocation4 + $0x9] sm:$0xfc] %v1321_v11 }
 0x432   :  { %v1326_v12 = vld [vmem:[#allocation4 + $0xb] sm:$0xff] }
 0x433   :  { %v1327_v13 = vpack.c.bf16 %v1326_v12, %v1315_v9 }
 0x435   :  { %2107 = vmatmul.mubr.bf16.vlgmr.msra.gmra.mrb[16].mxu1 %v1327_v13 }
 0x436   :  { %2120 = vmatprep.mubr.bf16.mxu1 %v2226_v61 }
 0x508   :  { %v1433_v18 = vpop.f32.mrb[16].mxu1 }
 0x509   :  { %v1434_v19 = vadd.f32 %v1782_v17, %v1433_v18  ;;  %v2108_v20 = vpop.f32.mrb[17].mxu1 }
 0x50a   :  { %v1436_v21 = vpop.f32.mrb[18].mxu1 }
 0x50b   :  { %v1442_v22 = vmul.f32 1.442695, %v1434_v19  ;;  %v1437_v23 = vadd.f32 %v1782_v17, %v1436_v21  ;;  %v2109_v24 = vpop.f32.mrb[19].mxu1  ;;  %vm1440_vm15 = vcmp.gt.f32.partialorder %v1434_v19, 0.0 }
 0x50d   :  { %2250 = vpow2.f32 %v1442_v22  ;;  %v1444_v25 = vmul.f32 1.442695, %v1437_v23  ;;  %vm1441_vm0 = vcmp.gt.f32.partialorder %v1437_v23, 0.0 }
 0x50f   :  { %2252 = vpow2.f32 %v1444_v25 }
 0x517   :  { %v2251_v26 = vpop.eup %2250 }
 0x518   :  { %v1791_v27 = vadd.f32 -1.0, %v2251_v26 }
 0x519   :  { %v2253_v28 = vpop.eup %2252 }
 0x51a   :  { %v1448_v29 = vmul.f32 1.6732632, %v1791_v27  ;;  %v1792_v30 = vadd.f32 -1.0, %v2253_v28 }
 0x51c   :  { %v1450_v31 = vsel %vm1440_vm15, %v1434_v19, %v1448_v29  ;;  %v1449_v32 = vmul.f32 1.6732632, %v1792_v30 }
 0x51d   :  { %v1452_v34 = vmul.f32 1.050701, %v1450_v31 }
 0x51e   :  { %v1451_v33 = vsel %vm1441_vm0, %v1437_v23, %v1449_v32 }
 0x51f   :  { %v1453_v35 = vmul.f32 1.050701, %v1451_v33 }
 0x521   :  { %v1470_v36 = vpack.c.bf16 %v1453_v35, %v1452_v34 }
 0x523   :  { %2110 = vmatprep.subr.bf16.mxu0 %v1470_v36  ;;  %2128 = vmatprep.subr.bf16.mxu1 %v1470_v36 }
 0x524   :  { %2111 = vmatpush3.bf16.xpose.msra.mxu0 %v1470_v36  ;;  %2129 = vmatpush3.bf16.xpose.msra.mxu1 %v1470_v36 }
 0x52b   :  { %2113 = vmatmul.mubr.bf16.vlgmr.msra.gmra.mrb[20].mxu0 %v2225_v37  ;;  %2121 = vmatmul.mubr.bf16.vlgmr.msra.gmra.mrb[20].mxu1 %v2227_v38 }
 0x52c   :  { %2116 = vmatprep.mubr.bf16.mxu0 %v2228_v39  ;;  %2124 = vmatprep.mubr.bf16.mxu1 %v2229_v40 }
 0x533   :  { %2117 = vmatmul.mubr.bf16.gmra.mrb[24].mxu0 %v2230_v41  ;;  %2125 = vmatmul.mubr.bf16.gmra.mrb[24].mxu1 %v2231_v42 }
 0x5fe   :  { %v2114_v44 = vpop.f32.mrb[20].mxu0  ;;  %v2122_v0 = vpop.f32.mrb[20].mxu1 }
 0x5ff   :  { %v1634_v45 = vpop.f32.mrb[21].mxu0  ;;  %v1659_v46 = vpop.f32.mrb[21].mxu1 }
 0x600   :  { %v1635_v47 = vadd.f32 %v1634_v45, %v1490_v43  ;;  %v2115_v48 = vpop.f32.mrb[22].mxu0  ;;  %v2123_v49 = vpop.f32.mrb[22].mxu1 }
 0x601   :  { %v1637_v50 = vpop.f32.mrb[23].mxu0  ;;  %v1661_v51 = vpop.f32.mrb[23].mxu1 }
 0x602   :  { %1685 = vrot.lane.b32.xlu1 %v1635_v47, %s2385_s15  ;;  %1683 = vst.msk [vmem:[%s2654_s11] sm:$0x3f] %vm1682_vm1, %v1635_v47 }
 0x606   :  { %v2118_v52 = vpop.f32.mrb[24].mxu0  ;;  %v2126_v53 = vpop.f32.mrb[24].mxu1 }
 0x607   :  { %v1647_v54 = vpop.f32.mrb[25].mxu0  ;;  %v1671_v55 = vpop.f32.mrb[25].mxu1 }
 0x608   :  { %v2119_v56 = vpop.f32.mrb[26].mxu0  ;;  %v2127_v57 = vpop.f32.mrb[26].mxu1 }
 0x609   :  { %v1649_v58 = vpop.f32.mrb[27].mxu0  ;;  %v1673_v59 = vpop.f32.mrb[27].mxu1 }
 0x674   :  { %v1686_v60 = vpop.permute.xlu1 %1685 }
 0x675   :  { %1801 = vst.msk [vmem:[%s2654_s11 + $0x8] sm:$0x3f] %vm1682_vm1, %v1686_v60 }
 0x676   :  { %1694 = vsyncpa [#allocation6], 1 }
 0x677   :  { %1695 = vsyncpa [#allocation8], 1 }
 0x678   :  { %1696 = vsyncpa [#allocation11], 1 }

</bundles_post_ra>
